<compile_context>
chip_gen: v7x
topology: tpu7x:2x2x1
jax: 0.10.0
libtpu: 0.0.40
codegen_flags: <defaults>
</compile_context>

<pallas_src>
import functools

import jax
import jax.numpy as jnp
from jax.experimental import pallas as pl
from jax.experimental.pallas import tpu as pltpu


def _round_up(x, m):
    return (x + m - 1) // m * m


# --------------------------------------------------------------------------
# Kernel
# --------------------------------------------------------------------------
def _bottleneck_kernel(x_ref, w1_ref, w2_ref, w3_ref, b1_ref, b2_ref, b3_ref,
                       o_ref, col0_ref, col1_ref, *, H, W):
    # x_ref   : (Mp, Cp)   activations for Nb whole images, flattened pixels
    # w1_ref  : (Cp, Pp)   1x1 conv, BN1 scale folded in
    # w2_ref  : (9*Pp, Pp) 3x3 conv in im2col layout, BN2 scale folded in
    # w3_ref  : (Pp, Cp)   1x1 conv, BN3 scale folded in
    # b*_ref  : (1, Pp|Cp) fused BN biases (f32)
    # o_ref   : (Mp, Cp)   output
    # col*_ref: (Mp, 3*Pp) im2col chunk scratch (two slots, compute dtype)
    Mp, Cp = x_ref.shape
    Pp = w1_ref.shape[1]
    cdt = col0_ref.dtype
    f32 = jnp.float32
    HW = H * W

    x = x_ref[...]                                             # (Mp, Cp) cdt

    # ---- conv1 (1x1) + bn1 + relu ---------------------------------------
    t1 = jnp.dot(x, w1_ref[...], preferred_element_type=f32)
    t1 = jnp.maximum(t1 + b1_ref[...], 0.0)                    # (Mp, Pp) f32
    t1c = t1.astype(cdt)                                       # cast once

    # ---- boundary masks, generated in-kernel ------------------------------
    # Row/col of every output pixel via f32 iota + floor (exact for the block
    # sizes used here; no integer vector division needed).  Masks zero the
    # taps whose 3x3 neighbour falls outside the image (zero padding).
    r = jax.lax.broadcasted_iota(jnp.int32, (Mp, 1), 0).astype(f32)
    img = jnp.floor((r + 0.5) * (1.0 / HW))
    p = r - img * HW                       # pixel index within its image
    hh = jnp.floor((p + 0.5) * (1.0 / W))  # row within image (exact integer)
    ww = p - hh * W                        # col within image (exact integer)

    def _mask(cond):
        return jnp.where(cond, 1.0, 0.0).astype(cdt)           # (Mp, 1)

    mh = {0: _mask(hh >= 0.5), 1: None, 2: _mask(hh <= H - 1.5)}
    mw = {0: _mask(ww >= 0.5), 1: None, 2: _mask(ww <= W - 1.5)}

    # ---- conv2 (3x3, stride 1, pad 1) + bn2 + relu ------------------------
    # Chunked accumulating im2col: one K = 3*Pp matmul per kernel row (dh),
    # alternating scratch slots so the next chunk's rolls/masks/stores can
    # overlap with the MXU work of the current chunk.
    col_slots = (col0_ref, col1_ref)
    t2 = None
    for dh in range(3):
        cref = col_slots[dh & 1]
        for dw in range(3):
            if dh == 1 and dw == 1:
                tap = t1c                                       # center tap
            else:
                shift = (-((dh - 1) * W + (dw - 1))) % Mp
                # sublane rotate (XLU); kept f32 for portability (see header)
                rolled = t1 if shift == 0 else pltpu.roll(t1, shift, 0)
                m = mh[dh]
                if mw[dw] is not None:
                    m = mw[dw] if m is None else m * mw[dw]
                tap = rolled.astype(cdt) * m
            cref[:, dw * Pp:(dw + 1) * Pp] = tap
        part = jnp.dot(cref[...],
                       w2_ref[dh * 3 * Pp:(dh + 1) * 3 * Pp, :],
                       preferred_element_type=f32)
        t2 = part if t2 is None else t2 + part
    t2 = jnp.maximum(t2 + b2_ref[...], 0.0)                     # (Mp, Pp) f32

    # ---- conv3 (1x1) + bn3 + residual + relu ------------------------------
    t3 = jnp.dot(t2.astype(cdt), w3_ref[...], preferred_element_type=f32)
    t3 = t3 + b3_ref[...] + x_ref[...].astype(f32)              # residual re-read
    o_ref[...] = jnp.maximum(t3, 0.0).astype(o_ref.dtype)


# --------------------------------------------------------------------------
# Host wrapper
# --------------------------------------------------------------------------
def _pick_batch_block(N, HW):
    """Images per grid step: keep >=2 grid steps (v7x megacore), M ~ 512."""
    best_key, best_d = None, 1
    for d in range(1, N + 1):
        if N % d:
            continue
        m, g = d * HW, N // d
        key = (0 if (g >= 2 or N == 1) else 1,   # feed both TensorCores
               0 if m <= 4096 else 1,            # bound per-step VMEM footprint
               abs(m - 512))                     # fill the MXU M dimension
        if best_key is None or key < best_key:
            best_key, best_d = key, d
    return best_d


def _vmem_budget_bytes():
    """Generation-aware VMEM budget: 3/4 of physical VMEM per TensorCore."""
    phys = 64 * 1024 * 1024            # conservative default (v7x = smallest)
    try:
        info = pltpu.get_tpu_info()
        for attr in ("vmem_capacity_bytes", "vmem_size_bytes", "vmem_bytes"):
            v = getattr(info, attr, None)
            if v:
                phys = int(v)
                break
    except Exception:
        pass
    return (phys * 3) // 4             # headroom for Mosaic internals/pipeline


def bottleneck_pallas(x_nhwc, w1_io, w2_hwio, w3_io,
                      s1, b1, s2, b2, s3, b3,
                      *, compute_dtype=jnp.float32, out_dtype=jnp.float32,
                      batch_block=None):
    """Bottleneck forward (stride=1, downsample=None, eval-mode BN).

    x_nhwc : (N, H, W, Cin) f32
    w1_io  : (Cin, P)      conv1 weights (1x1, IO layout)
    w2_hwio: (3, 3, P, P)  conv2 weights (HWIO layout)
    w3_io  : (P, Cout)     conv3 weights (1x1, IO layout)
    s*/b*  : (C,) fused inference-mode BN scale / bias per stage
    compute_dtype: bf16 recommended on all of v5e/v6e/v7x (epilogue stays f32).
    """
    N, H, W, Cin = x_nhwc.shape
    P = w1_io.shape[1]
    Cout = w3_io.shape[1]
    assert Cout == Cin, "downsample=None requires inplanes == planes * expansion"

    f32 = jnp.float32
    cdt = jnp.dtype(compute_dtype)
    isz = cdt.itemsize
    osz = jnp.dtype(out_dtype).itemsize

    # Lane-dense padded channel sizes (multiples of 128).
    Cp = _round_up(Cin, 128)
    Pp = _round_up(P, 128)

    HW = H * W
    Nb = batch_block if batch_block is not None else _pick_batch_block(N, HW)
    assert N % Nb == 0
    G = N // Nb
    M0 = Nb * HW
    Mp = _round_up(M0, 16)             # sublane aligned (also bf16 packing)

    # ---- fold BN scales into conv weights; pad channels lane-dense --------
    w1f = w1_io.astype(f32) * s1[None, :]
    w2f = w2_hwio.astype(f32) * s2[None, None, None, :]
    w3f = w3_io.astype(f32) * s3[None, :]
    w1p = jnp.zeros((Cp, Pp), f32).at[:Cin, :P].set(w1f).astype(cdt)
    w2p = (jnp.zeros((3, 3, Pp, Pp), f32).at[:, :, :P, :P].set(w2f)
           .reshape(9 * Pp, Pp).astype(cdt))
    w3p = jnp.zeros((Pp, Cp), f32).at[:P, :Cout].set(w3f).astype(cdt)
    b1p = jnp.zeros((1, Pp), f32).at[0, :P].set(b1)
    b2p = jnp.zeros((1, Pp), f32).at[0, :P].set(b2)
    b3p = jnp.zeros((1, Cp), f32).at[0, :Cout].set(b3)

    # ---- flatten spatial dims host-side (no in-kernel relayout) -----------
    x_flat = x_nhwc.reshape(G, M0, Cin)
    x_flat = jnp.pad(x_flat, ((0, 0), (0, Mp - M0), (0, Cp - Cin))).astype(cdt)
    x_flat = x_flat.reshape(G * Mp, Cp)

    # ---- VMEM working set (with default double-buffering) -----------------
    vmem_est = (2 * Mp * Cp * isz                               # x blocks
                + 2 * Mp * Cp * osz                             # out blocks
                + 2 * (Cp * Pp + 9 * Pp * Pp + Pp * Cp) * isz   # weights
                + 2 * 8 * (2 * Pp + Cp) * 4                     # biases (padded)
                + 2 * Mp * 3 * Pp * isz                         # col chunk slots
                + Mp * Pp * (4 + isz + 4))                      # t1/t1c/t2 temps
    budget = _vmem_budget_bytes()
    vmem_limit = int(min(budget, max(vmem_est * 5 // 4, 32 * 1024 * 1024)))

    flops = 2 * G * Mp * (Cp * Pp + 9 * Pp * Pp + Pp * Cp)
    bytes_accessed = (x_flat.size * isz + G * Mp * Cp * osz
                      + (Cp * Pp + 9 * Pp * Pp + Pp * Cp + 2 * Pp + Cp) * isz)

    grid_spec = pltpu.PrefetchScalarGridSpec(
        num_scalar_prefetch=0,
        grid=(G,),
        in_specs=[
            pl.BlockSpec((Mp, Cp), lambda n: (n, 0)),
            pl.BlockSpec((Cp, Pp), lambda n: (0, 0)),
            pl.BlockSpec((9 * Pp, Pp), lambda n: (0, 0)),
            pl.BlockSpec((Pp, Cp), lambda n: (0, 0)),
            pl.BlockSpec((1, Pp), lambda n: (0, 0)),
            pl.BlockSpec((1, Pp), lambda n: (0, 0)),
            pl.BlockSpec((1, Cp), lambda n: (0, 0)),
        ],
        out_specs=pl.BlockSpec((Mp, Cp), lambda n: (n, 0)),
        scratch_shapes=[pltpu.VMEM((Mp, 3 * Pp), cdt),
                        pltpu.VMEM((Mp, 3 * Pp), cdt)],
    )

    kernel = functools.partial(_bottleneck_kernel, H=H, W=W)
    out = pl.pallas_call(
        kernel,
        out_shape=jax.ShapeDtypeStruct((G * Mp, Cp), out_dtype),
        grid_spec=grid_spec,
        compiler_params=pltpu.CompilerParams(
            dimension_semantics=("parallel",),
            vmem_limit_bytes=vmem_limit),
        cost_estimate=pl.CostEstimate(flops=int(flops), transcendentals=0,
                                      bytes_accessed=int(bytes_accessed)),
    )(x_flat, w1p, w2p, w3p, b1p, b2p, b3p)

    out = out.reshape(G, Mp, Cp)[:, :M0, :Cout].reshape(N, H, W, Cout)
    return out


# ----------------------------- reference (pure JAX) ------------------------
def bottleneck_ref(x_nhwc, w1_hwio, w2_hwio, w3_hwio, s1, b1, s2, b2, s3, b3):
    def conv(x, w, pad):
        return jax.lax.conv_general_dilated(
            x, w, window_strides=(1, 1), padding=pad,
            dimension_numbers=("NHWC", "HWIO", "NHWC"))

    t = jax.nn.relu(conv(x_nhwc, w1_hwio, "VALID") * s1 + b1)
    t = jax.nn.relu(conv(t, w2_hwio, [(1, 1), (1, 1)]) * s2 + b2)
    t = conv(t, w3_hwio, "VALID") * s3 + b3 + x_nhwc
    return jax.nn.relu(t)


if __name__ == "__main__":
    key = jax.random.PRNGKey(0)
    N, H, W = 2, 8, 8
    planes = 8
    inplanes = planes * 4          # 32; downsample=None => residual shape match
    Cout = planes * 4
    eps = 1e-5                     # PyTorch BatchNorm2d default

    ks = jax.random.split(key, 8)
    x_nhwc = jax.random.normal(ks[0], (N, H, W, inplanes), jnp.float32)

    # Conv weights in PyTorch OIHW -> HWIO for the reference, IO matmul forms
    # for the kernel.
    w1_oihw = jax.random.normal(ks[1], (planes, inplanes, 1, 1), jnp.float32) * 0.1
    w2_oihw = jax.random.normal(ks[2], (planes, planes, 3, 3), jnp.float32) * 0.1
    w3_oihw = jax.random.normal(ks[3], (Cout, planes, 1, 1), jnp.float32) * 0.1

    w1_hwio = jnp.transpose(w1_oihw, (2, 3, 1, 0))           # (1,1,Cin,P)
    w2_hwio = jnp.transpose(w2_oihw, (2, 3, 1, 0))           # (3,3,P,P)
    w3_hwio = jnp.transpose(w3_oihw, (2, 3, 1, 0))           # (1,1,P,Cout)

    w1_io = w1_hwio.reshape(inplanes, planes)
    w3_io = w3_hwio.reshape(planes, Cout)

    def make_bn(k, c):
        k1, k2, k3, k4 = jax.random.split(k, 4)
        gamma = jax.random.uniform(k1, (c,), jnp.float32, 0.5, 1.5)
        beta = jax.random.normal(k2, (c,), jnp.float32) * 0.1
        mean = jax.random.normal(k3, (c,), jnp.float32) * 0.1
        var = jax.random.uniform(k4, (c,), jnp.float32, 0.5, 1.5)
        scale = gamma / jnp.sqrt(var + eps)
        bias = beta - mean * scale
        return scale, bias

    s1, b1 = make_bn(ks[4], planes)
    s2, b2 = make_bn(ks[5], planes)
    s3, b3 = make_bn(ks[6], Cout)

    ref = bottleneck_ref(x_nhwc, w1_hwio, w2_hwio, w3_hwio,
                         s1, b1, s2, b2, s3, b3)
    ref = jax.block_until_ready(ref)

    # f32 compute path (tight check).
    out_f32 = bottleneck_pallas(x_nhwc, w1_io, w2_hwio, w3_io,
                                s1, b1, s2, b2, s3, b3,
                                compute_dtype=jnp.float32)
    out_f32 = jax.block_until_ready(out_f32)
    assert out_f32.shape == (N, H, W, Cout)
    if not jnp.allclose(out_f32, ref, atol=2e-3, rtol=2e-3):
        raise AssertionError("Pallas Bottleneck (f32) mismatch vs JAX reference")

    # bf16-on-MXU path (recommended on v5e/v6e/v7x; epilogue stays f32).
    out_bf16 = bottleneck_pallas(x_nhwc, w1_io, w2_hwio, w3_io,
                                 s1, b1, s2, b2, s3, b3,
                                 compute_dtype=jnp.bfloat16)
    out_bf16 = jax.block_until_ready(out_bf16)
    assert out_bf16.shape == (N, H, W, Cout)
    if not jnp.allclose(out_bf16, ref, atol=5e-2, rtol=5e-2):
        raise AssertionError("Pallas Bottleneck (bf16) mismatch vs JAX reference")

    print("KERNEL_OK")
</pallas_src>

<mosaic_0001>
module attributes {stable_mosaic.version = 11 : i64} {
  func.func @_bottleneck_kernel(%arg0: i32, %arg1: memref<64x128xf32, #tpu.memory_space<vmem>>, %arg2: memref<128x128xf32, #tpu.memory_space<vmem>>, %arg3: memref<1152x128xf32, #tpu.memory_space<vmem>>, %arg4: memref<128x128xf32, #tpu.memory_space<vmem>>, %arg5: memref<1x128xf32, #tpu.memory_space<vmem>>, %arg6: memref<1x128xf32, #tpu.memory_space<vmem>>, %arg7: memref<1x128xf32, #tpu.memory_space<vmem>>, %arg8: memref<64x128xf32, #tpu.memory_space<vmem>>, %arg9: memref<64x384xf32, #tpu.memory_space<vmem>>, %arg10: memref<64x384xf32, #tpu.memory_space<vmem>>) attributes {dimension_semantics = [#tpu.dimension_semantics<parallel>], iteration_bounds = array<i64: 2>, scalar_prefetch = 0 : i64, scratch_operands = 2 : i64, tpu.core_type = #tpu.core_type<tc>, window_params = [{transform_indices = @transform_0, window_bounds = array<i64: 64, 128>}, {pipeline_mode = #tpu.pipeline_mode<synchronous>, transform_indices = @transform_1, window_bounds = array<i64: 128, 128>}, {pipeline_mode = #tpu.pipeline_mode<synchronous>, transform_indices = @transform_2, window_bounds = array<i64: 1152, 128>}, {pipeline_mode = #tpu.pipeline_mode<synchronous>, transform_indices = @transform_3, window_bounds = array<i64: 128, 128>}, {pipeline_mode = #tpu.pipeline_mode<synchronous>, transform_indices = @transform_4, window_bounds = array<i64: 1, 128>}, {pipeline_mode = #tpu.pipeline_mode<synchronous>, transform_indices = @transform_5, window_bounds = array<i64: 1, 128>}, {pipeline_mode = #tpu.pipeline_mode<synchronous>, transform_indices = @transform_6, window_bounds = array<i64: 1, 128>}, {transform_indices = @transform_7, window_bounds = array<i64: 64, 128>}]} {
    %c0 = arith.constant 0 : index
    %c0_0 = arith.constant 0 : index
    %0 = vector.load %arg1[%c0, %c0_0] : memref<64x128xf32, #tpu.memory_space<vmem>>, vector<64x128xf32>
    %c0_1 = arith.constant 0 : index
    %c0_2 = arith.constant 0 : index
    %1 = vector.load %arg2[%c0_1, %c0_2] : memref<128x128xf32, #tpu.memory_space<vmem>>, vector<128x128xf32>
    %cst = arith.constant dense<0.000000e+00> : vector<64x128xf32>
    %2 = tpu.matmul %0, %1, %cst {dimension_numbers = #tpu.dot_dimension_numbers<[1], [0], [0], [1], [0, 0, 1, 1], [], []>} : vector<64x128xf32>, vector<128x128xf32>, vector<64x128xf32> -> vector<64x128xf32>
    %c0_3 = arith.constant 0 : index
    %c0_4 = arith.constant 0 : index
    %3 = vector.load %arg5[%c0_3, %c0_4] : memref<1x128xf32, #tpu.memory_space<vmem>>, vector<1x128xf32>
    %4 = vector.broadcast %3 : vector<1x128xf32> to vector<64x128xf32>
    %5 = arith.addf %2, %4 : vector<64x128xf32>
    %cst_5 = arith.constant 0.000000e+00 : f32
    %6 = vector.broadcast %cst_5 : f32 to vector<64x128xf32>
    %7 = arith.maximumf %5, %6 : vector<64x128xf32>
    %8 = tpu.iota {dimensions = array<i32: 0>} : vector<64x1xi32>
    %9 = arith.sitofp %8 : vector<64x1xi32> to vector<64x1xf32>
    %cst_6 = arith.constant 5.000000e-01 : f32
    %10 = vector.broadcast %cst_6 : f32 to vector<64x1xf32>
    %11 = arith.addf %9, %10 : vector<64x1xf32>
    %cst_7 = arith.constant 1.562500e-02 : f32
    %12 = vector.broadcast %cst_7 : f32 to vector<64x1xf32>
    %13 = arith.mulf %11, %12 : vector<64x1xf32>
    %14 = math.floor %13 : vector<64x1xf32>
    %cst_8 = arith.constant 6.400000e+01 : f32
    %15 = vector.broadcast %cst_8 : f32 to vector<64x1xf32>
    %16 = arith.mulf %14, %15 : vector<64x1xf32>
    %17 = arith.subf %9, %16 : vector<64x1xf32>
    %cst_9 = arith.constant 5.000000e-01 : f32
    %18 = vector.broadcast %cst_9 : f32 to vector<64x1xf32>
    %19 = arith.addf %17, %18 : vector<64x1xf32>
    %cst_10 = arith.constant 1.250000e-01 : f32
    %20 = vector.broadcast %cst_10 : f32 to vector<64x1xf32>
    %21 = arith.mulf %19, %20 : vector<64x1xf32>
    %22 = math.floor %21 : vector<64x1xf32>
    %cst_11 = arith.constant 8.000000e+00 : f32
    %23 = vector.broadcast %cst_11 : f32 to vector<64x1xf32>
    %24 = arith.mulf %22, %23 : vector<64x1xf32>
    %25 = arith.subf %17, %24 : vector<64x1xf32>
    %cst_12 = arith.constant 5.000000e-01 : f32
    %26 = vector.broadcast %cst_12 : f32 to vector<64x1xf32>
    %27 = arith.cmpf oge, %22, %26 : vector<64x1xf32>
    %cst_13 = arith.constant 1.000000e+00 : f32
    %cst_14 = arith.constant 0.000000e+00 : f32
    %28 = vector.broadcast %cst_13 : f32 to vector<64x1xf32>
    %29 = vector.broadcast %cst_14 : f32 to vector<64x1xf32>
    %30 = arith.select %27, %28, %29 : vector<64x1xi1>, vector<64x1xf32>
    %cst_15 = arith.constant 6.500000e+00 : f32
    %31 = vector.broadcast %cst_15 : f32 to vector<64x1xf32>
    %32 = arith.cmpf ole, %22, %31 : vector<64x1xf32>
    %cst_16 = arith.constant 1.000000e+00 : f32
    %cst_17 = arith.constant 0.000000e+00 : f32
    %33 = vector.broadcast %cst_16 : f32 to vector<64x1xf32>
    %34 = vector.broadcast %cst_17 : f32 to vector<64x1xf32>
    %35 = arith.select %32, %33, %34 : vector<64x1xi1>, vector<64x1xf32>
    %cst_18 = arith.constant 5.000000e-01 : f32
    %36 = vector.broadcast %cst_18 : f32 to vector<64x1xf32>
    %37 = arith.cmpf oge, %25, %36 : vector<64x1xf32>
    %cst_19 = arith.constant 1.000000e+00 : f32
    %cst_20 = arith.constant 0.000000e+00 : f32
    %38 = vector.broadcast %cst_19 : f32 to vector<64x1xf32>
    %39 = vector.broadcast %cst_20 : f32 to vector<64x1xf32>
    %40 = arith.select %37, %38, %39 : vector<64x1xi1>, vector<64x1xf32>
    %cst_21 = arith.constant 6.500000e+00 : f32
    %41 = vector.broadcast %cst_21 : f32 to vector<64x1xf32>
    %42 = arith.cmpf ole, %25, %41 : vector<64x1xf32>
    %cst_22 = arith.constant 1.000000e+00 : f32
    %cst_23 = arith.constant 0.000000e+00 : f32
    %43 = vector.broadcast %cst_22 : f32 to vector<64x1xf32>
    %44 = vector.broadcast %cst_23 : f32 to vector<64x1xf32>
    %45 = arith.select %42, %43, %44 : vector<64x1xi1>, vector<64x1xf32>
    %c9_i32 = arith.constant 9 : i32
    %46 = tpu.dynamic_rotate %7 by %c9_i32 dim 0 : vector<64x128xf32>, i32 -> vector<64x128xf32>
    %47 = arith.mulf %30, %40 : vector<64x1xf32>
    %48 = vector.broadcast %47 : vector<64x1xf32> to vector<64x128xf32>
    %49 = arith.mulf %46, %48 : vector<64x128xf32>
    %c0_24 = arith.constant 0 : index
    %c0_25 = arith.constant 0 : index
    %50 = vector.load %arg9[%c0_24, %c0_25] : memref<64x384xf32, #tpu.memory_space<vmem>>, vector<64x128xf32>
    tpu.vector_store %arg9[%c0_24, %c0_25], %49 {strides = array<i32>} : memref<64x384xf32, #tpu.memory_space<vmem>>, vector<64x128xf32>,
    %c8_i32 = arith.constant 8 : i32
    %51 = tpu.dynamic_rotate %7 by %c8_i32 dim 0 : vector<64x128xf32>, i32 -> vector<64x128xf32>
    %52 = vector.broadcast %30 : vector<64x1xf32> to vector<64x128xf32>
    %53 = arith.mulf %51, %52 : vector<64x128xf32>
    %c0_26 = arith.constant 0 : index
    %c128 = arith.constant 128 : index
    %54 = vector.load %arg9[%c0_26, %c128] : memref<64x384xf32, #tpu.memory_space<vmem>>, vector<64x128xf32>
    tpu.vector_store %arg9[%c0_26, %c128], %53 {strides = array<i32>} : memref<64x384xf32, #tpu.memory_space<vmem>>, vector<64x128xf32>,
    %c7_i32 = arith.constant 7 : i32
    %55 = tpu.dynamic_rotate %7 by %c7_i32 dim 0 : vector<64x128xf32>, i32 -> vector<64x128xf32>
    %56 = arith.mulf %30, %45 : vector<64x1xf32>
    %57 = vector.broadcast %56 : vector<64x1xf32> to vector<64x128xf32>
    %58 = arith.mulf %55, %57 : vector<64x128xf32>
    %c0_27 = arith.constant 0 : index
    %c256 = arith.constant 256 : index
    %59 = vector.load %arg9[%c0_27, %c256] : memref<64x384xf32, #tpu.memory_space<vmem>>, vector<64x128xf32>
    tpu.vector_store %arg9[%c0_27, %c256], %58 {strides = array<i32>} : memref<64x384xf32, #tpu.memory_space<vmem>>, vector<64x128xf32>,
    %c0_28 = arith.constant 0 : index
    %c0_29 = arith.constant 0 : index
    %60 = vector.load %arg9[%c0_28, %c0_29] : memref<64x384xf32, #tpu.memory_space<vmem>>, vector<64x384xf32>
    %c0_30 = arith.constant 0 : index
    %c0_31 = arith.constant 0 : index
    %61 = vector.load %arg3[%c0_30, %c0_31] : memref<1152x128xf32, #tpu.memory_space<vmem>>, vector<384x128xf32>
    %cst_32 = arith.constant dense<0.000000e+00> : vector<64x128xf32>
    %62 = tpu.matmul %60, %61, %cst_32 {dimension_numbers = #tpu.dot_dimension_numbers<[1], [0], [0], [1], [0, 0, 1, 1], [], []>} : vector<64x384xf32>, vector<384x128xf32>, vector<64x128xf32> -> vector<64x128xf32>
    %c1_i32 = arith.constant 1 : i32
    %63 = tpu.dynamic_rotate %7 by %c1_i32 dim 0 : vector<64x128xf32>, i32 -> vector<64x128xf32>
    %64 = vector.broadcast %40 : vector<64x1xf32> to vector<64x128xf32>
    %65 = arith.mulf %63, %64 : vector<64x128xf32>
    %c0_33 = arith.constant 0 : index
    %c0_34 = arith.constant 0 : index
    %66 = vector.load %arg10[%c0_33, %c0_34] : memref<64x384xf32, #tpu.memory_space<vmem>>, vector<64x128xf32>
    tpu.vector_store %arg10[%c0_33, %c0_34], %65 {strides = array<i32>} : memref<64x384xf32, #tpu.memory_space<vmem>>, vector<64x128xf32>,
    %c0_35 = arith.constant 0 : index
    %c128_36 = arith.constant 128 : index
    %67 = vector.load %arg10[%c0_35, %c128_36] : memref<64x384xf32, #tpu.memory_space<vmem>>, vector<64x128xf32>
    tpu.vector_store %arg10[%c0_35, %c128_36], %7 {strides = array<i32>} : memref<64x384xf32, #tpu.memory_space<vmem>>, vector<64x128xf32>,
    %c63_i32 = arith.constant 63 : i32
    %68 = tpu.dynamic_rotate %7 by %c63_i32 dim 0 : vector<64x128xf32>, i32 -> vector<64x128xf32>
    %69 = vector.broadcast %45 : vector<64x1xf32> to vector<64x128xf32>
    %70 = arith.mulf %68, %69 : vector<64x128xf32>
    %c0_37 = arith.constant 0 : index
    %c256_38 = arith.constant 256 : index
    %71 = vector.load %arg10[%c0_37, %c256_38] : memref<64x384xf32, #tpu.memory_space<vmem>>, vector<64x128xf32>
    tpu.vector_store %arg10[%c0_37, %c256_38], %70 {strides = array<i32>} : memref<64x384xf32, #tpu.memory_space<vmem>>, vector<64x128xf32>,
    %c0_39 = arith.constant 0 : index
    %c0_40 = arith.constant 0 : index
    %72 = vector.load %arg10[%c0_39, %c0_40] : memref<64x384xf32, #tpu.memory_space<vmem>>, vector<64x384xf32>
    %c384 = arith.constant 384 : index
    %c0_41 = arith.constant 0 : index
    %73 = vector.load %arg3[%c384, %c0_41] : memref<1152x128xf32, #tpu.memory_space<vmem>>, vector<384x128xf32>
    %cst_42 = arith.constant dense<0.000000e+00> : vector<64x128xf32>
    %74 = tpu.matmul %72, %73, %cst_42 {dimension_numbers = #tpu.dot_dimension_numbers<[1], [0], [0], [1], [0, 0, 1, 1], [], []>} : vector<64x384xf32>, vector<384x128xf32>, vector<64x128xf32> -> vector<64x128xf32>
    %75 = arith.addf %62, %74 : vector<64x128xf32>
    %c57_i32 = arith.constant 57 : i32
    %76 = tpu.dynamic_rotate %7 by %c57_i32 dim 0 : vector<64x128xf32>, i32 -> vector<64x128xf32>
    %77 = arith.mulf %35, %40 : vector<64x1xf32>
    %78 = vector.broadcast %77 : vector<64x1xf32> to vector<64x128xf32>
    %79 = arith.mulf %76, %78 : vector<64x128xf32>
    %c0_43 = arith.constant 0 : index
    %c0_44 = arith.constant 0 : index
    %80 = vector.load %arg9[%c0_43, %c0_44] : memref<64x384xf32, #tpu.memory_space<vmem>>, vector<64x128xf32>
    tpu.vector_store %arg9[%c0_43, %c0_44], %79 {strides = array<i32>} : memref<64x384xf32, #tpu.memory_space<vmem>>, vector<64x128xf32>,
    %c56_i32 = arith.constant 56 : i32
    %81 = tpu.dynamic_rotate %7 by %c56_i32 dim 0 : vector<64x128xf32>, i32 -> vector<64x128xf32>
    %82 = vector.broadcast %35 : vector<64x1xf32> to vector<64x128xf32>
    %83 = arith.mulf %81, %82 : vector<64x128xf32>
    %c0_45 = arith.constant 0 : index
    %c128_46 = arith.constant 128 : index
    %84 = vector.load %arg9[%c0_45, %c128_46] : memref<64x384xf32, #tpu.memory_space<vmem>>, vector<64x128xf32>
    tpu.vector_store %arg9[%c0_45, %c128_46], %83 {strides = array<i32>} : memref<64x384xf32, #tpu.memory_space<vmem>>, vector<64x128xf32>,
    %c55_i32 = arith.constant 55 : i32
    %85 = tpu.dynamic_rotate %7 by %c55_i32 dim 0 : vector<64x128xf32>, i32 -> vector<64x128xf32>
    %86 = arith.mulf %35, %45 : vector<64x1xf32>
    %87 = vector.broadcast %86 : vector<64x1xf32> to vector<64x128xf32>
    %88 = arith.mulf %85, %87 : vector<64x128xf32>
    %c0_47 = arith.constant 0 : index
    %c256_48 = arith.constant 256 : index
    %89 = vector.load %arg9[%c0_47, %c256_48] : memref<64x384xf32, #tpu.memory_space<vmem>>, vector<64x128xf32>
    tpu.vector_store %arg9[%c0_47, %c256_48], %88 {strides = array<i32>} : memref<64x384xf32, #tpu.memory_space<vmem>>, vector<64x128xf32>,
    %c0_49 = arith.constant 0 : index
    %c0_50 = arith.constant 0 : index
    %90 = vector.load %arg9[%c0_49, %c0_50] : memref<64x384xf32, #tpu.memory_space<vmem>>, vector<64x384xf32>
    %c768 = arith.constant 768 : index
    %c0_51 = arith.constant 0 : index
    %91 = vector.load %arg3[%c768, %c0_51] : memref<1152x128xf32, #tpu.memory_space<vmem>>, vector<384x128xf32>
    %cst_52 = arith.constant dense<0.000000e+00> : vector<64x128xf32>
    %92 = tpu.matmul %90, %91, %cst_52 {dimension_numbers = #tpu.dot_dimension_numbers<[1], [0], [0], [1], [0, 0, 1, 1], [], []>} : vector<64x384xf32>, vector<384x128xf32>, vector<64x128xf32> -> vector<64x128xf32>
    %93 = arith.addf %75, %92 : vector<64x128xf32>
    %c0_53 = arith.constant 0 : index
    %c0_54 = arith.constant 0 : index
    %94 = vector.load %arg6[%c0_53, %c0_54] : memref<1x128xf32, #tpu.memory_space<vmem>>, vector<1x128xf32>
    %95 = vector.broadcast %94 : vector<1x128xf32> to vector<64x128xf32>
    %96 = arith.addf %93, %95 : vector<64x128xf32>
    %cst_55 = arith.constant 0.000000e+00 : f32
    %97 = vector.broadcast %cst_55 : f32 to vector<64x128xf32>
    %98 = arith.maximumf %96, %97 : vector<64x128xf32>
    %c0_56 = arith.constant 0 : index
    %c0_57 = arith.constant 0 : index
    %99 = vector.load %arg4[%c0_56, %c0_57] : memref<128x128xf32, #tpu.memory_space<vmem>>, vector<128x128xf32>
    %cst_58 = arith.constant dense<0.000000e+00> : vector<64x128xf32>
    %100 = tpu.matmul %98, %99, %cst_58 {dimension_numbers = #tpu.dot_dimension_numbers<[1], [0], [0], [1], [0, 0, 1, 1], [], []>} : vector<64x128xf32>, vector<128x128xf32>, vector<64x128xf32> -> vector<64x128xf32>
    %c0_59 = arith.constant 0 : index
    %c0_60 = arith.constant 0 : index
    %101 = vector.load %arg7[%c0_59, %c0_60] : memref<1x128xf32, #tpu.memory_space<vmem>>, vector<1x128xf32>
    %102 = vector.broadcast %101 : vector<1x128xf32> to vector<64x128xf32>
    %103 = arith.addf %100, %102 : vector<64x128xf32>
    %c0_61 = arith.constant 0 : index
    %c0_62 = arith.constant 0 : index
    %104 = vector.load %arg1[%c0_61, %c0_62] : memref<64x128xf32, #tpu.memory_space<vmem>>, vector<64x128xf32>
    %105 = arith.addf %103, %104 : vector<64x128xf32>
    %cst_63 = arith.constant 0.000000e+00 : f32
    %106 = vector.broadcast %cst_63 : f32 to vector<64x128xf32>
    %107 = arith.maximumf %105, %106 : vector<64x128xf32>
    %c0_64 = arith.constant 0 : index
    %c0_65 = arith.constant 0 : index
    %108 = vector.load %arg8[%c0_64, %c0_65] : memref<64x128xf32, #tpu.memory_space<vmem>>, vector<64x128xf32>
    tpu.vector_store %arg8[%c0_64, %c0_65], %107 {strides = array<i32>} : memref<64x128xf32, #tpu.memory_space<vmem>>, vector<64x128xf32>,
    return
  }
  func.func @transform_0(%arg0: i32) -> (i32, i32) {
    %c0_i32 = arith.constant 0 : i32
    %c0_i32_0 = arith.constant 0 : i32
    return %arg0, %c0_i32 : i32, i32
  }
  func.func @transform_1(%arg0: i32) -> (i32, i32) {
    %c0_i32 = arith.constant 0 : i32
    %c0_i32_0 = arith.constant 0 : i32
    %c0_i32_1 = arith.constant 0 : i32
    return %c0_i32, %c0_i32_0 : i32, i32
  }
  func.func @transform_2(%arg0: i32) -> (i32, i32) {
    %c0_i32 = arith.constant 0 : i32
    %c0_i32_0 = arith.constant 0 : i32
    %c0_i32_1 = arith.constant 0 : i32
    return %c0_i32, %c0_i32_0 : i32, i32
  }
  func.func @transform_3(%arg0: i32) -> (i32, i32) {
    %c0_i32 = arith.constant 0 : i32
    %c0_i32_0 = arith.constant 0 : i32
    %c0_i32_1 = arith.constant 0 : i32
    return %c0_i32, %c0_i32_0 : i32, i32
  }
  func.func @transform_4(%arg0: i32) -> (i32, i32) {
    %c0_i32 = arith.constant 0 : i32
    %c0_i32_0 = arith.constant 0 : i32
    %c0_i32_1 = arith.constant 0 : i32
    return %c0_i32, %c0_i32_0 : i32, i32
  }
  func.func @transform_5(%arg0: i32) -> (i32, i32) {
    %c0_i32 = arith.constant 0 : i32
    %c0_i32_0 = arith.constant 0 : i32
    %c0_i32_1 = arith.constant 0 : i32
    return %c0_i32, %c0_i32_0 : i32, i32
  }
  func.func @transform_6(%arg0: i32) -> (i32, i32) {
    %c0_i32 = arith.constant 0 : i32
    %c0_i32_0 = arith.constant 0 : i32
    %c0_i32_1 = arith.constant 0 : i32
    return %c0_i32, %c0_i32_0 : i32, i32
  }
  func.func @transform_7(%arg0: i32) -> (i32, i32) {
    %c0_i32 = arith.constant 0 : i32
    %c0_i32_0 = arith.constant 0 : i32
    return %arg0, %c0_i32 : i32, i32
  }
}

</mosaic_0001>

<bundles_post_ra>
// kernel: tpu_custom_call.1
= control target key start
LH: loop header
LB: loop body
LE: loop exit
PB: predicated region body
PF: predicated region fallthrough
CT: control target
= control target key end

     0   :  { %12 = vsyncpa [#allocation5], 0  ;;  %s4156_s0 = inlined_call_operand.hbm [shape: f32[128,128], index: 0, kind: input, shape index: {}]   ;;  %s4157_s1 = inlined_call_operand.hbm [shape: f32[128,128], index: 1, kind: input, shape index: {}]   ;;  %s4158_s2 = inlined_call_operand.hbm [shape: f32[1152,128], index: 2, kind: input, shape index: {}]   ;;  %s4159_s3 = inlined_call_operand.hbm [shape: f32[128,128], index: 3, kind: input, shape index: {}]   ;;  %s4160_s4 = inlined_call_operand.vmem [shape: f32[1,128], index: 4, kind: input, shape index: {}]   ;;  %s4161_s5 = inlined_call_operand.vmem [shape: f32[1,128], index: 5, kind: input, shape index: {}]   ;;  %s4162_s6 = inlined_call_operand.vmem [shape: f32[1,128], index: 6, kind: input, shape index: {}]   ;;  %s4163_s7 = inlined_call_operand.hbm [shape: f32[128,128], index: 7, kind: output, shape index: {}]  }
   0x1   :  { %14 = vsyncpa [#allocation5 + $0x1], 0 }
   0x2   :  { %15 = vsyncpa [#allocation8], 0 }
   0x3   :  { %16 = vsyncpa [#allocation11], 0 }
   0x4   :  { %17 = vsyncpa [#allocation6], 0 }
   0x5   :  { %19 = vsyncpa [#allocation6 + $0x1], 0  ;;  %s3154_s24 = smov 0   ;;  %s3156_s25 = smov 0  }
   0x6   :  { %s3158_s26 = smov 0   ;;  %s3160_s27 = smov 0  }
   0x7 LB: > { %s3175_s28 = sadd.s32 4294967295, %s3102_s27   ;;  %s2003_s29 = sadd.s32 4294967294, %s3102_s27   ;;  %s3102_s27 = sphi %s3160_s27, %s4323_s27   ;;  %s3098_s26 = sphi %s3158_s26, %s4322_s26   ;;  %s3094_s25 = sphi %s3156_s25, %s4321_s25   ;;  %s3090_s24 = sphi %s3154_s24, %s4320_s24  }
   0x8   : > { %p45_p0 = scmp.ne.s32.totalorder %s3094_s25, %s3090_s24  ;;  %p4164_p1 = scmp.eq.s32.totalorder %s3175_s28, 0 }
   0x9   : > { %p201_p3 = scmp.eq.s32.totalorder %s2003_s29, 1  ;;  %p2004_p5 = scmp.ge.s32.totalorder %s3102_s27, 1 }
   0xa   : > { %p3184_p4 = por %p4164_p1, %p45_p0  ;;  %p208_p7 = scmp.lt.s32.totalorder %s3102_s27, 3 }
   0xb   : > { %p3189_p6 = por %p201_p3, %p45_p0  ;;  %s3104_s10 = smov [#allocation7]  }
   0xc   : > { %s4209_s30 = scalar_select %p3184_p4, 1, 0 }
   0xd   : > { %s4210_s8 = scalar_select %p3189_p6, 1, 0 }
   0xe   : > { %p3194_p8 = pnand %p2004_p5, %p208_p7  ;;  %s220_s11 = sshll.u32 %s3104_s10, 4  ;;  %s3198_s11 = int_to_ptr.vmem [resolvable:$true] %s220_s11 }
   0xf   : > { %4211 = sst [smem:[#allocation17_spill]] %s4210_s8  ;;  %s3105_s13 = smov [#allocation9]  }
  0x10   : > { %s4212_s9 = scalar_select %p3194_p8, 1, 0 }
  0x11   : > { %p2848_p9 = pneg %p3194_p8  ;;  %s233_s14 = sshll.u32 %s3105_s13, 4  ;;  %s3209_s14 = int_to_ptr.vmem [resolvable:$true] %s233_s14 }
  0x12   : > { %s3106_s15 = smov [#allocation10]   ;;  %s2914_s19 = scalar_lea.hbm %s4157_s1, 2048 }
  0x13   : > { %p3205_p11 = pnand %p2848_p9, %p4164_p1  ;;  %s3211_s16 = sshll.u32 %s3106_s15, 4  ;;  %s247_s16 = int_to_ptr.vmem [resolvable:$true] %s3211_s16 }
  0x14   : > { %p2915_p12 = scmp.ne.s32.totalorder %s4157_s1, %s2914_s19  ;;  %p2921_p5 = scmp.lt.u32.totalorder %s2914_s19, %s4157_s1 }
  0x15   : > { %p3221_p13 = pneg %p3205_p11 }
  0x17   : > { %p2917_p0 = pnand %p3221_p13, %p2915_p12 }
  0x19   : > { %p2918_p3 = pneg %p2917_p0 }
  0x1b   : > { %p2923_p7 = pnand %p2921_p5, %p2918_p3 }
  0x1d   : > { %2926 = shalt.err (!%p2923_p7)
}
  0x1e   : > { %s2927_s10 = scalar_lea.vmem %s3198_s11, 2048  ;;  %p2935_p2 = scmp.lt.s32.totalorder %s3198_s11, %s3198_s11 }
  0x1f   : > { %p2928_p9 = scmp.ne.s32.totalorder %s3198_s11, %s2927_s10  ;;  %p2936_p6 = scmp.lt.s32.totalorder %s2927_s10, %s2927_s10 }
  0x21   : > { %p2930_p10 = pnand %p2928_p9, %p3221_p13  ;;  %p2937_p12 = por %p2936_p6, %p2935_p2 }
  0x23   : > { %p2931_p1 = pneg %p2930_p10 }
  0x25   : > { %p2938_p0 = pnand %p2937_p12, %p2931_p1 }
  0x27   : > { %2941 = shalt.err (!%p2938_p0)
}
  0x28   : > { %s3107_s13 = smov 128   ;;  %s3108_s15 = smov 8  }
  0x29   : > { %2851 = dma.hbm_to_vmem [thread:$0]  (!%p3205_p11), %s4157_s1, 2048, %s3198_s11, [#allocation8], %s3107_s13, %s3107_s13, %s3108_s15  }
  0x2a   : > { %s2942_s21 = scalar_lea.hbm %s4158_s2, 18432 }
  0x2b   : > { %p2943_p1 = scmp.ne.s32.totalorder %s4158_s2, %s2942_s21  ;;  %p2949_p10 = scmp.lt.u32.totalorder %s2942_s21, %s4158_s2 }
  0x2d   : > { %p2945_p2 = pnand %p2943_p1, %p3221_p13 }
  0x2f   : > { %p2946_p6 = pneg %p2945_p2 }
  0x31   : > { %p2951_p3 = pnand %p2949_p10, %p2946_p6 }
  0x33   : > { %2954 = shalt.err (!%p2951_p3)
}
  0x34   : > { %s2955_s11 = scalar_lea.vmem %s3209_s14, 18432  ;;  %p2963_p12 = scmp.lt.s32.totalorder %s3209_s14, %s3209_s14 }
  0x35   : > { %p2956_p5 = scmp.ne.s32.totalorder %s3209_s14, %s2955_s11  ;;  %p2964_p0 = scmp.lt.s32.totalorder %s2955_s11, %s2955_s11 }
  0x37   : > { %p2958_p7 = pnand %p2956_p5, %p3221_p13  ;;  %p2965_p1 = por %p2964_p0, %p2963_p12 }
  0x39   : > { %p2959_p9 = pneg %p2958_p7 }
  0x3b   : > { %p2966_p2 = pnand %p2965_p1, %p2959_p9 }
  0x3d   : > { %2969 = shalt.err (!%p2966_p2)
}
  0x3e   : > { %2854 = dma.hbm_to_vmem [thread:$0]  (!%p3205_p11), %s4158_s2, 18432, %s3209_s14, [#allocation8], %s3107_s13, %s3107_s13, %s3108_s15  }
  0x3f   : > { %s2970_s20 = scalar_lea.hbm %s4159_s3, 2048 }
  0x40   : > { %p2971_p6 = scmp.ne.s32.totalorder %s4159_s3, %s2970_s20  ;;  %p2977_p5 = scmp.lt.u32.totalorder %s2970_s20, %s4159_s3 }
  0x42   : > { %p2973_p10 = pnand %p2971_p6, %p3221_p13 }
  0x44   : > { %p2974_p3 = pneg %p2973_p10 }
  0x46   : > { %p2979_p7 = pnand %p2977_p5, %p2974_p3 }
  0x48   : > { %2982 = shalt.err (!%p2979_p7)
}
  0x49   : > { %s2983_s11 = scalar_lea.vmem %s247_s16, 2048  ;;  %p2991_p1 = scmp.lt.s32.totalorder %s247_s16, %s247_s16 }
  0x4a   : > { %p2984_p9 = scmp.ne.s32.totalorder %s247_s16, %s2983_s11  ;;  %p2992_p2 = scmp.lt.s32.totalorder %s2983_s11, %s2983_s11 }
  0x4c   : > { %p2986_p12 = pnand %p2984_p9, %p3221_p13  ;;  %p2993_p4 = por %p2992_p2, %p2991_p1 }
  0x4e   : > { %p2987_p0 = pneg %p2986_p12 }
  0x50   : > { %p2994_p8 = pnand %p2993_p4, %p2987_p0 }
  0x52   : > { %2997 = shalt.err (!%p2994_p8)
}
  0x53   : > { %2857 = dma.hbm_to_vmem [thread:$0]  (!%p3205_p11), %s4159_s3, 2048, %s247_s16, [#allocation11], %s3107_s13, %s3107_s13, %s3108_s15  }
  0x54   : > { %s3294_s22 = sadd.s32 1, %s3102_s27   ;;  %s32_s17 = sadd.s32 1, %s3098_s26 }
  0x55   : > { %s29_s12 = ssub.s32 %s3102_s27, %s3294_s22  ;;  %p39_p8 = scmp.ne.s32.totalorder %s3098_s26, %s3094_s25 }
  0x56   : > { %p30_p4 = scmp.eq.s32.totalorder %s29_s12, 0  ;;  %p40_p13 = scmp.eq.s32.totalorder %s3102_s27, 0 }
  0x57   : > { %p2869_p6 = scmp.lt.s32.totalorder %s3102_s27, 2  ;;  %p4215_p3 = scmp.eq.s32.totalorder %s3175_s28, 1 }
  0x58   : > { %s3304_s18 = scalar_select %p30_p4, %s3098_s26, %s32_s17  }
  0x59   : > { %p41_p10 = por %p40_p13, %p39_p8  ;;  %p3308_p5 = por %p4215_p3, %p39_p8 }
  0x5a   : > { %s269_s20 = sand.u32 1, %s3098_s26   ;;  %s2026_s21 = sshll.u32 %s3102_s27, 10 }
  0x5b   : > { %s2009_s16 = sshll.u32 %s269_s20, 6  ;;  %s3317_s10 = scalar_lea.hbm %s4156_s0, %s2026_s21 }
  0x5c   : > { %s273_s11 = scalar_lea.vmem [#allocation4], %s2009_s16  ;;  %p3319_p11 = pnand %p2869_p6, %p41_p10 }
  0x5d   : > { %s280_s14 = sshll.u32 %s273_s11, 4  ;;  %s3325_s12 = scalar_lea.sflag [#allocation5], %s269_s20  ;;  %s3323_s14 = int_to_ptr.vmem [resolvable:$true] %s280_s14 }
  0x5e   : > { %s2998_s17 = scalar_lea.hbm %s3317_s10, 1024  ;;  %p3000_p9 = pneg %p3319_p11 }
  0x5f   : > { %p2999_p7 = scmp.ne.s32.totalorder %s3317_s10, %s2998_s17  ;;  %s3003_s23 = scalar_lea.hbm %s4156_s0, 2048 }
  0x60   : > { %p3004_p1 = scmp.lt.u32.totalorder %s3317_s10, %s4156_s0  ;;  %p3005_p2 = scmp.lt.u32.totalorder %s3003_s23, %s2998_s17 }
  0x61   : > { %p3001_p12 = pnand %p3000_p9, %p2999_p7  ;;  %p3007_p8 = scmp.lt.u32.totalorder %s2998_s17, %s3317_s10 }
  0x62   : > { %p3006_p4 = por %p3005_p2, %p3004_p1 }
  0x63   : > { %p3002_p0 = pneg %p3001_p12 }
  0x64   : > { %p3008_p13 = por %p3007_p8, %p3006_p4 }
  0x66   : > { %p3009_p6 = pnand %p3008_p13, %p3002_p0 }
  0x68   : > { %3012 = shalt.err (!%p3009_p6)
}
  0x69   : > { %s3013_s20 = scalar_lea.vmem %s3323_s14, 1024  ;;  %s3109_s21 = smov [#allocation4]  }
  0x6a   : > { %p3014_p10 = scmp.ne.s32.totalorder %s3323_s14, %s3013_s20  ;;  %s3018_s16 = sshll.u32 %s3109_s21, 4  ;;  %s3019_s16 = int_to_ptr.vmem [resolvable:$false] %s3018_s16 }
  0x6b   : > { %s3020_s29 = scalar_lea.vmem %s3019_s16, 2048  ;;  %p3021_p12 = scmp.lt.s32.totalorder %s3323_s14, %s3019_s16 }
  0x6c   : > { %p3016_p3 = pnand %p3014_p10, %p3000_p9  ;;  %p3022_p1 = scmp.lt.s32.totalorder %s3020_s29, %s3013_s20 }
  0x6e   : > { %p3017_p7 = pneg %p3016_p3  ;;  %p3023_p2 = por %p3022_p1, %p3021_p12 }
  0x70   : > { %p3024_p4 = pnand %p3023_p2, %p3017_p7 }
  0x72   : > { %3027 = shalt.err (!%p3024_p4)
}
  0x73   : > { %2861 = dma.hbm_to_vmem [thread:$0]  (!%p3319_p11), %s3317_s10, 1024, %s3323_s14, %s3325_s12, %s3107_s13, %s3107_s13, %s3108_s15  }
  0x74   : > { %p4218_p9 = scmp.ne.s32.totalorder %s4212_s9, 0 }
  0x76   : > { %292 = sbr.rel (%p4218_p9) target bundleno = 956 (0x3bc), region = 48 }
  0x7d   : > { %s3359_s17 = sand.u32 1, %s3094_s25   ;;  %p4219_p0 = scmp.ne.s32.totalorder %s4209_s30, 0 }
  0x7e   : > { %s2013_s23 = sshll.u32 %s3359_s17, 6  ;;  %s295_s11 = scalar_lea.sflag [#allocation5], %s3359_s17 }
  0x7f   : > { %s3365_s8 = scalar_lea.vmem [#allocation4], %s2013_s23 }
  0x80   : > { %3073 = dma.done.wait (%p4219_p0), %s295_s11, 1024  }
  0x81   : > { %3075 = vsyncadd (%p4219_p0), %s295_s11, 4294966272  ;;  %p4220_p11 = scmp.eq.s32.totalorder %s3175_s28, 0 }
  0x83   : > { %3077 = dma.done.wait (%p4220_p11), [#allocation8], 20480   ;;  %p4221_p8 = pmov %p4220_p11 }
  0x85   : > { %3079 = vsyncadd (%p4221_p8), [#allocation8], 4294946816  ;;  %p4222_p13 = pmov %p4221_p8 }
  0x86   : > { %p4223_p6 = pmov %p4221_p8 }
  0x87   : > { %3081 = dma.done.wait (%p4222_p13), [#allocation11], 2048  }
  0x88   : > { %3083 = vsyncadd (%p4223_p6), [#allocation11], 4294965248  ;;  %v351_v0 = vld [vmem:[#allocation7] sm:$0xff]  ;;  %v352_v1 = vld [vmem:[#allocation7 + $0x8] sm:$0xff]  ;;  %s4089_s12 = scalar_lea.vmem [#allocation12], %s2013_s23  ;;  %s2027_s21 = sshll.u32 %s3175_s28, 10 }
  0x89   : > { %v353_v2 = vld [vmem:[#allocation7 + $0x10] sm:$0xff]  ;;  %v2536_v3 = vpack.c.bf16 %v352_v1, %v351_v0  ;;  %v354_v4 = vld [vmem:[#allocation7 + $0x18] sm:$0xff]  ;;  %v355_v6 = vld [vmem:[#allocation7 + $0x20] sm:$0xff]  ;;  %v487_v1 = vlaneseq  ;;  %s1901_s20 = sshll.u32 %s4089_s12, 4  ;;  %s4110_s23 = scalar_lea.hbm %s4163_s7, %s2027_s21  ;;  %s4105_s20 = int_to_ptr.vmem [resolvable:$true] %s1901_s20 }
  0x8a   : > { %v2540_v5 = vpack.c.bf16 %v354_v4, %v353_v2  ;;  %v356_v7 = vld [vmem:[#allocation7 + $0x28] sm:$0xff]  ;;  %v343_v9 = vld [vmem:[%s3365_s8] sm:$0xff]  ;;  %v357_v10 = vld [vmem:[#allocation7 + $0x30] sm:$0xff]  ;;  %s1888_s11 = scalar_lea.sflag [#allocation6], %s3359_s17  ;;  %s3111_s28 = smov [#allocation12]  }
  0x8b   : > { %2537 = vmatprep.subr.bf16.mxu0 %v2536_v3  ;;  %v2544_v8 = vpack.c.bf16 %v356_v7, %v355_v6  ;;  %v358_v11 = vld [vmem:[#allocation7 + $0x38] sm:$0xff]  ;;  %2348 = vmatprep.mubr.f32.mxu0 %v343_v9  ;;  %v359_v13 = vld [vmem:[#allocation7 + $0x40] sm:$0xff]  ;;  %v899_v15 = vld [vmem:[#allocation9 + $0x208] sm:$0xff]  ;;  %v3387_v2 = vshrl.u32 %v487_v1, 7  ;;  %s3032_s30 = sshll.u32 %s3111_s28, 4  ;;  %s3033_s30 = int_to_ptr.vmem [resolvable:$false] %s3032_s30 }
  0x8c   : > { %2539 = vmatpush3.bf16.msra.mxu0 %v2536_v3  ;;  %v2548_v12 = vpack.c.bf16 %v358_v11, %v357_v10  ;;  %v898_v14 = vld [vmem:[#allocation9 + $0x200] sm:$0xff]  ;;  %v360_v16 = vld [vmem:[#allocation7 + $0x48] sm:$0xff]  ;;  %v900_v21 = vld [vmem:[#allocation9 + $0x210] sm:$0xff]  ;;  %s3034_s9 = scalar_lea.vmem %s3033_s30, 2048  ;;  %p3035_p12 = scmp.lt.s32.totalorder %s4105_s20, %s3033_s30 }
  0x8d   : > { %2541 = vmatprep.subr.bf16.mxu0 %v2540_v5  ;;  %v2568_v17 = vpack.c.bf16 %v899_v15, %v898_v14  ;;  %v882_v18 = vld [vmem:[#allocation9 + $0x180] sm:$0xff]  ;;  %v883_v19 = vld [vmem:[#allocation9 + $0x188] sm:$0xff]  ;;  %v901_v22 = vld [vmem:[#allocation9 + $0x218] sm:$0xff]  ;;  %v2552_v26 = vpack.c.bf16 %v360_v16, %v359_v13  ;;  %v489_v3 = vadd.s32 8, %v3387_v2  ;;  %v3391_v9 = vadd.s32 16, %v3387_v2 }
  0x8e   : > { %v2570_v20 = vpack.c.bf16 %v883_v19, %v882_v18  ;;  %v2572_v23 = vpack.c.bf16 %v901_v22, %v900_v21  ;;  %v884_v24 = vld [vmem:[#allocation9 + $0x190] sm:$0xff]  ;;  %v885_v25 = vld [vmem:[#allocation9 + $0x198] sm:$0xff]  ;;  %v902_v29 = vld [vmem:[#allocation9 + $0x220] sm:$0xff]  ;;  %v3396_v11 = vadd.s32 24, %v3387_v2  ;;  %v3402_v13 = vadd.s32 56, %v3387_v2 }
  0x8f   : > { %2569 = vmatprep.subr.bf16.mxu1 %v2568_v17  ;;  %v361_v27 = vld [vmem:[#allocation7 + $0x50] sm:$0xff]  ;;  %v2574_v28 = vpack.c.bf16 %v885_v25, %v884_v24  ;;  %v903_v30 = vld [vmem:[#allocation9 + $0x228] sm:$0xff]  ;;  %v362_v31 = vld [vmem:[#allocation7 + $0x58] sm:$0xff]  ;;  %v497_v4 = vcvt.s32.f32 %v489_v3  ;;  %v498_v14 = vcvt.s32.f32 %v3391_v9  ;;  %v3406_v15 = vadd.s32 48, %v3387_v2 }
  0x90   : > { %2543 = vmatpush3.bf16.msra.mxu0 %v2540_v5  ;;  %2571 = vmatpush3.bf16.msra.mxu1 %v2570_v20  ;;  %v2576_v32 = vpack.c.bf16 %v903_v30, %v902_v29  ;;  %v886_v33 = vld [vmem:[#allocation9 + $0x1a0] sm:$0xff]  ;;  %v887_v34 = vld [vmem:[#allocation9 + $0x1a8] sm:$0xff]  ;;  %v2556_v35 = vpack.c.bf16 %v362_v31, %v361_v27  ;;  %v365_v40 = vld [vmem:[#allocation7 + $0x70] sm:$0xff]  ;;  %v499_v20 = vcvt.s32.f32 %v3396_v11  ;;  %v3412_v22 = vadd.s32 40, %v3387_v2 }
  0x91   : > { %2545 = vmatprep.subr.bf16.mxu0 %v2544_v8  ;;  %2573 = vmatprep.subr.bf16.mxu1 %v2572_v23  ;;  %v2578_v36 = vpack.c.bf16 %v887_v34, %v886_v33  ;;  %v363_v37 = vld [vmem:[#allocation7 + $0x60] sm:$0xff]  ;;  %v364_v38 = vld [vmem:[#allocation7 + $0x68] sm:$0xff]  ;;  %v366_v41 = vld [vmem:[#allocation7 + $0x78] sm:$0xff]  ;;  %v505_v5 = vadd.f32 0.5, %v497_v4  ;;  %v506_v30 = vadd.f32 0.5, %v498_v14  ;;  %v502_v31 = vcvt.s32.f32 %v3406_v15 }
  0x92   : > { %v2560_v39 = vpack.c.bf16 %v364_v38, %v363_v37  ;;  %v2564_v42 = vpack.c.bf16 %v366_v41, %v365_v40  ;;  %v914_v43 = vld [vmem:[#allocation9 + $0x280] sm:$0xff]  ;;  %v915_v44 = vld [vmem:[#allocation9 + $0x288] sm:$0xff]  ;;  %v916_v46 = vld [vmem:[#allocation9 + $0x290] sm:$0xff]  ;;  %v501_v38 = vcvt.s32.f32 %v3412_v22  ;;  %vm713_vm11 = vcmp.lt.s32.totalorder %v3387_v2, 7 }
  0x93   : > { %v2600_v45 = vpack.c.bf16 %v915_v44, %v914_v43  ;;  %v917_v47 = vld [vmem:[#allocation9 + $0x298] sm:$0xff]  ;;  %v344_v48 = vld [vmem:[%s3365_s8 + $0x8] sm:$0xff]  ;;  %v345_v49 = vld [vmem:[%s3365_s8 + $0x10] sm:$0xff]  ;;  %v513_v6 = vmul.f32 0.015625, %v505_v5  ;;  %vm656_vm15 = vcmp.lt.s32.totalorder %v3387_v2, 1 }
  0x94   : > { %2547 = vmatpush3.bf16.msra.mxu0 %v2544_v8  ;;  %2575 = vmatpush3.bf16.msra.mxu1 %v2574_v28  ;;  %v2604_v50 = vpack.c.bf16 %v917_v47, %v916_v46  ;;  %v918_v51 = vld [vmem:[#allocation9 + $0x2a0] sm:$0xff]  ;;  %v919_v52 = vld [vmem:[#allocation9 + $0x2a8] sm:$0xff]  ;;  %v346_v53 = vld [vmem:[%s3365_s8 + $0x18] sm:$0xff]  ;;  %v514_v46 = vmul.f32 0.015625, %v506_v30  ;;  %v510_v47 = vadd.f32 0.5, %v502_v31 }
  0x95   : > { %2549 = vmatprep.subr.bf16.mxu0 %v2548_v12  ;;  %2577 = vmatprep.subr.bf16.mxu1 %v2576_v32  ;;  %v347_v54 = vld [vmem:[%s3365_s8 + $0x20] sm:$0xff]  ;;  %v2608_v55 = vpack.c.bf16 %v919_v52, %v918_v51  ;;  %v920_v56 = vld [vmem:[#allocation9 + $0x2b0] sm:$0xff]  ;;  %v921_v57 = vld [vmem:[#allocation9 + $0x2b8] sm:$0xff]  ;;  %v521_v7 = vfloor.f32 %v513_v6 }
  0x96   : > { %v348_v58 = vld [vmem:[%s3365_s8 + $0x28] sm:$0xff]  ;;  %v349_v59 = vld [vmem:[%s3365_s8 + $0x30] sm:$0xff]  ;;  %v2612_v60 = vpack.c.bf16 %v921_v57, %v920_v56  ;;  %v922_v61 = vld [vmem:[#allocation9 + $0x2c0] sm:$0xff]  ;;  %v518_v1 = vmul.f32 0.015625, %v510_v47 }
  0x97   : > { %v923_v62 = vld [vmem:[#allocation9 + $0x2c8] sm:$0xff]  ;;  %v350_v63 = vld [vmem:[%s3365_s8 + $0x38] sm:$0xff]  ;;  %v529_v8 = vmul.f32 64.0, %v521_v7  ;;  %v904_v16 = vld [vmem:[#allocation9 + $0x230] sm:$0xff] }
  0x98   : > { %2551 = vmatpush3.bf16.msra.mxu0 %v2548_v12  ;;  %2579 = vmatpush3.bf16.msra.mxu1 %v2578_v36  ;;  %v2616_v0 = vpack.c.bf16 %v923_v62, %v922_v61  ;;  %v3399_v12 = vadd.s32 32, %v3387_v2  ;;  %v905_v17 = vld [vmem:[#allocation9 + $0x238] sm:$0xff]  ;;  %v924_v18 = vld [vmem:[#allocation9 + $0x2d0] sm:$0xff]  ;;  %v906_v32 = vld [vmem:[#allocation9 + $0x240] sm:$0xff]  ;;  %v507_v36 = vadd.f32 0.5, %v499_v20  ;;  %v522_v62 = vfloor.f32 %v514_v46 }
  0x99   : > { %2553 = vmatprep.subr.bf16.mxu0 %v2552_v26  ;;  %v3393_v10 = vsub.f32 %v497_v4, %v529_v8  ;;  %v2580_v23 = vpack.c.bf16 %v905_v17, %v904_v16  ;;  %v888_v24 = vld [vmem:[#allocation9 + $0x1b0] sm:$0xff]  ;;  %v889_v25 = vld [vmem:[#allocation9 + $0x1b8] sm:$0xff]  ;;  %v907_v33 = vld [vmem:[#allocation9 + $0x248] sm:$0xff] }
  0x9a   : > { %v500_v21 = vcvt.s32.f32 %v3399_v12  ;;  %v2582_v27 = vpack.c.bf16 %v889_v25, %v888_v24  ;;  %v925_v28 = vld [vmem:[#allocation9 + $0x2d8] sm:$0xff]  ;;  %v926_v34 = vld [vmem:[#allocation9 + $0x2e0] sm:$0xff]  ;;  %v891_v41 = vld [vmem:[#allocation9 + $0x1c8] sm:$0xff]  ;;  %v515_v52 = vmul.f32 0.015625, %v507_v36 }
  0x9b   : > { %v545_v19 = vadd.f32 0.5, %v3393_v10  ;;  %2581 = vmatprep.subr.bf16.mxu1 %v2580_v23  ;;  %v2620_v29 = vpack.c.bf16 %v925_v28, %v924_v18  ;;  %v890_v40 = vld [vmem:[#allocation9 + $0x1c0] sm:$0xff]  ;;  %v892_v56 = vld [vmem:[#allocation9 + $0x1d0] sm:$0xff]  ;;  %v893_v57 = vld [vmem:[#allocation9 + $0x1d8] sm:$0xff]  ;;  %v526_v28 = vfloor.f32 %v518_v1 }
  0x9c   : > { %2555 = vmatpush3.bf16.msra.mxu0 %v2552_v26  ;;  %v503_v26 = vcvt.s32.f32 %v3402_v13  ;;  %2583 = vmatpush3.bf16.msra.mxu1 %v2582_v27  ;;  %v508_v37 = vadd.f32 0.5, %v500_v21  ;;  %v2586_v44 = vpack.c.bf16 %v891_v41, %v890_v40  ;;  %v910_v3 = vld [vmem:[#allocation9 + $0x260] sm:$0xff]  ;;  %v911_v4 = vld [vmem:[#allocation9 + $0x268] sm:$0xff]  ;;  %v523_v6 = vfloor.f32 %v515_v52 }
  0x9d   : > { %2557 = vmatprep.subr.bf16.mxu0 %v2556_v35  ;;  %v802_v5 = vld [vmem:[#allocation9 + $0x100] sm:$0xff]  ;;  %v2592_v16 = vpack.c.bf16 %v911_v4, %v910_v3  ;;  %v895_v18 = vld [vmem:[#allocation9 + $0x1e8] sm:$0xff]  ;;  %v530_v27 = vmul.f32 64.0, %v522_v62  ;;  %v496_v4 = vcvt.s32.f32 %v3387_v2 }
  0x9e   : > { %v511_v43 = vadd.f32 0.5, %v503_v26  ;;  %v894_v17 = vld [vmem:[#allocation9 + $0x1e0] sm:$0xff]  ;;  %v787_v47 = vld [vmem:[#allocation9 + $0x88] sm:$0xff] }
  0x9f   : > { %v2594_v23 = vpack.c.bf16 %v895_v18, %v894_v17  ;;  %v3440_v40 = vsub.f32 %v498_v14, %v530_v27  ;;  %v786_v46 = vld [vmem:[#allocation9 + $0x80] sm:$0xff] }
  0xa0   : > { %2559 = vmatpush3.bf16.msra.mxu0 %v2556_v35  ;;  %v553_v35 = vmul.f32 0.125, %v545_v19  ;;  %v803_v19 = vld [vmem:[#allocation9 + $0x108] sm:$0xff] }
  0xa1   : > { %2561 = vmatprep.subr.bf16.mxu0 %v2560_v39  ;;  %v3435_v24 = vpack.c.bf16 %v803_v19, %v802_v5  ;;  %v546_v14 = vadd.f32 0.5, %v3440_v40  ;;  %v504_v5 = vadd.f32 0.5, %v496_v4 }
  0xa2   : > { %v3427_v51 = vfloor.f32 %v553_v35  ;;  %v896_v35 = vld [vmem:[#allocation9 + $0x1f0] sm:$0xff] }
  0xa4   : > { %2563 = vmatpush3.bf16.msra.mxu0 %v2560_v39  ;;  %v2584_v39 = vpack.c.bf16 %v907_v33, %v906_v32  ;;  %4224 = vst [vmem:[#allocation18_spill] sm:$0xff] %v3427_v51  ;;  %vm601_vm0 = vcmp.le.f32.partialorder %v3427_v51, 6.5  ;;  %v912_v33 = vld [vmem:[#allocation9 + $0x270] sm:$0xff] }
  0xa5   : > { %2565 = vmatprep.subr.bf16.mxu0 %v2564_v42 }
  0xa6   : > { %2585 = vmatprep.subr.bf16.mxu1 %v2584_v39 }
  0xa7   : > { %2587 = vmatpush3.bf16.msra.mxu1 %v2586_v44 }
  0xa8   : > { %2567 = vmatpush3.bf16.msra.mxu0 %v2564_v42  ;;  %v927_v42 = vld [vmem:[#allocation9 + $0x2e8] sm:$0xff] }
  0xa9   : > { %2601 = vmatprep.subr.bf16.mxu0 %v2600_v45 }
  0xab   : > { %2349 = vmatmul.mubr.f32.vlgmr.msra.gmra.mrb[0].mxu0 %v344_v48  ;;  %v908_v48 = vld [vmem:[#allocation9 + $0x250] sm:$0xff] }
  0xac   : > { %2351 = vmatprep.mubr.f32.mxu0 %v345_v49  ;;  %2603 = vmatpush3.bf16.msra.mxu0 %v2600_v45  ;;  %v2624_v45 = vpack.c.bf16 %v927_v42, %v926_v34  ;;  %v909_v49 = vld [vmem:[#allocation9 + $0x258] sm:$0xff]  ;;  %v534_v42 = vmul.f32 64.0, %v526_v28 }
  0xad   : > { %2605 = vmatprep.subr.bf16.mxu0 %v2604_v50  ;;  %v913_v34 = vld [vmem:[#allocation9 + $0x278] sm:$0xff] }
  0xae   : > { %v2596_v36 = vpack.c.bf16 %v913_v34, %v912_v33 }
  0xaf   : > { %2352 = vmatmul.mubr.f32.gmra.mrb[2].mxu0 %v346_v53  ;;  %v516_v53 = vmul.f32 0.015625, %v508_v37  ;;  %v897_v37 = vld [vmem:[#allocation9 + $0x1f8] sm:$0xff] }
  0xb0   : > { %2354 = vmatprep.mubr.f32.mxu0 %v347_v54  ;;  %2607 = vmatpush3.bf16.msra.mxu0 %v2604_v50  ;;  %v928_v50 = vld [vmem:[#allocation9 + $0x2f0] sm:$0xff]  ;;  %v509_v54 = vadd.f32 0.5, %v501_v38  ;;  %v2598_v41 = vpack.c.bf16 %v897_v37, %v896_v35 }
  0xb1   : > { %2609 = vmatprep.subr.bf16.mxu0 %v2608_v55  ;;  %v524_v7 = vfloor.f32 %v516_v53 }
  0xb2   : > { %v517_v8 = vmul.f32 0.015625, %v509_v54 }
  0xb3   : > { %2355 = vmatmul.mubr.f32.gmra.mrb[4].mxu0 %v348_v58  ;;  %v929_v58 = vld [vmem:[#allocation9 + $0x2f8] sm:$0xff]  ;;  %v532_v30 = vmul.f32 64.0, %v524_v7 }
  0xb4   : > { %2357 = vmatprep.mubr.f32.mxu0 %v349_v59  ;;  %2611 = vmatpush3.bf16.msra.mxu0 %v2608_v55  ;;  %v2588_v55 = vpack.c.bf16 %v909_v49, %v908_v48  ;;  %v519_v59 = vmul.f32 0.015625, %v511_v43  ;;  %v2628_v61 = vpack.c.bf16 %v929_v58, %v928_v50  ;;  %v525_v32 = vfloor.f32 %v517_v8 }
  0xb5   : > { %2613 = vmatprep.subr.bf16.mxu0 %v2612_v60  ;;  %v3446_v44 = vsub.f32 %v500_v21, %v532_v30  ;;  %v2632_v48 = vpack.c.bf16 %v787_v47, %v786_v46  ;;  %v3453_v49 = vsub.f32 %v502_v31, %v534_v42  ;;  %v554_v50 = vmul.f32 0.125, %v546_v14  ;;  %v804_v47 = vld [vmem:[#allocation9 + $0x110] sm:$0xff] }
  0xb6   : > { %2589 = vmatprep.subr.bf16.mxu1 %v2588_v55  ;;  %v527_v25 = vfloor.f32 %v519_v59 }
  0xb7   : > { %2358 = vmatmul.mubr.f32.gmra.mrb[6].mxu0 %v350_v63  ;;  %v4170_v63 = vmov 0.0   ;;  %v550_v52 = vadd.f32 0.5, %v3453_v49  ;;  %v3462_v15 = vfloor.f32 %v554_v50 }
  0xb8   : > { %2615 = vmatpush3.bf16.msra.mxu0 %v2612_v60  ;;  %v2590_v60 = vpack.c.bf16 %v893_v57, %v892_v56  ;;  %v535_v39 = vmul.f32 64.0, %v527_v25  ;;  %v569_v25 = vmul.f32 8.0, %v3427_v51 }
  0xb9   : > { %2617 = vmatprep.subr.bf16.mxu0 %v2616_v0  ;;  %4225 = vst [vmem:[#allocation19_spill] sm:$0xff] %v3462_v15  ;;  %v558_v31 = vmul.f32 0.125, %v550_v52  ;;  %vm602_vm1 = vcmp.le.f32.partialorder %v3462_v15, 6.5  ;;  %v570_v30 = vmul.f32 8.0, %v3462_v15 }
  0xba   : > { %2591 = vmatpush3.bf16.msra.mxu1 %v2590_v60  ;;  %v543_v9 = vsub.f32 %v503_v26, %v535_v39 }
  0xbb   : > { %2593 = vmatprep.subr.bf16.mxu1 %v2592_v16  ;;  %v3476_v58 = vfloor.f32 %v558_v31  ;;  %v578_v35 = vsub.f32 %v3440_v40, %v570_v30 }
  0xbc   : > { %2619 = vmatpush3.bf16.msra.mxu0 %v2616_v0  ;;  %v3433_v0 = vsel %vm601_vm0, 1.0, %v4170_v63  ;;  %v551_v21 = vadd.f32 0.5, %v543_v9 }
  0xbd   : > { %2621 = vmatprep.subr.bf16.mxu0 %v2620_v29  ;;  %4229 = vst [vmem:[#allocation23_spill] sm:$0xff] %v3476_v58  ;;  %vm606_vm5 = vcmp.le.f32.partialorder %v3476_v58, 6.5  ;;  %vm634_vm10 = vcmp.le.f32.partialorder %v578_v35, 6.5 }
  0xbe   : > { %2595 = vmatpush3.bf16.msra.mxu1 %v2594_v23  ;;  %v559_v54 = vmul.f32 0.125, %v551_v21  ;;  %v3490_v62 = vsel %vm606_vm5, 1.0, %v4170_v63 }
  0xbf   : > { %2597 = vmatprep.subr.bf16.mxu1 %v2596_v36 }
  0xc0   : > { %2623 = vmatpush3.bf16.msra.mxu0 %v2620_v29  ;;  %v531_v29 = vmul.f32 64.0, %v523_v6  ;;  %v3469_v22 = vfloor.f32 %v559_v54  ;;  %v512_v6 = vmul.f32 0.015625, %v504_v5 }
  0xc1   : > { %2625 = vmatprep.subr.bf16.mxu0 %v2624_v45 }
  0xc2   : > { %v539_v43 = vsub.f32 %v499_v20, %v531_v29  ;;  %2599 = vmatpush3.bf16.msra.mxu1 %v2598_v41  ;;  %v548_v20 = vadd.f32 0.5, %v3446_v44  ;;  %4228 = vst [vmem:[#allocation22_spill] sm:$0xff] %v3469_v22  ;;  %vm607_vm4 = vcmp.le.f32.partialorder %v3469_v22, 6.5  ;;  %v520_v7 = vfloor.f32 %v512_v6 }
  0xc3   : > { %2633 = vmatprep.subr.bf16.mxu1 %v2632_v48  ;;  %v3493_v1 = vsel %vm607_vm4, 1.0, %v4170_v63  ;;  %v577_v29 = vsub.f32 %v3393_v10, %v569_v25  ;;  %v575_v33 = vmul.f32 8.0, %v3469_v22  ;;  %v3517_v10 = vld [vmem:[%s4160_s4] ss:$0 sm:$0xff]  ;;  %v805_v48 = vld [vmem:[#allocation9 + $0x118] sm:$0xff]  ;;  %v808_v22 = vld [vmem:[#allocation9 + $0x130] sm:$0xff] }
  0xc4   : > { %2627 = vmatpush3.bf16.msra.mxu0 %v2624_v45  ;;  %v533_v45 = vmul.f32 64.0, %v525_v32  ;;  %v547_v11 = vadd.f32 0.5, %v539_v43  ;;  %v556_v26 = vmul.f32 0.125, %v548_v20  ;;  %v528_v8 = vmul.f32 64.0, %v520_v7 }
  0xc5   : > { %2629 = vmatprep.subr.bf16.mxu0 %v2628_v61  ;;  %vm633_vm7 = vcmp.le.f32.partialorder %v577_v29, 6.5  ;;  %v3512_v37 = vsub.f32 %v543_v9, %v575_v33  ;;  %vm617_vm14 = vcmp.ge.f32.partialorder %v577_v29, 0.5  ;;  %v3566_v31 = vpack.c.bf16 %v805_v48, %v804_v47 }
  0xc6   : > { %v3458_v12 = vsub.f32 %v501_v38, %v533_v45  ;;  %v555_v13 = vmul.f32 0.125, %v547_v11  ;;  %v3466_v56 = vfloor.f32 %v556_v26  ;;  %v3472_v38 = vsel %vm602_vm1, 1.0, %v4170_v63 }
  0xc7   : > { %v536_v16 = vsub.f32 %v496_v4, %v528_v8  ;;  %v3520_v39 = vsel %vm633_vm7, 1.0, %v4170_v63  ;;  %vm618_vm1 = vcmp.ge.f32.partialorder %v578_v35, 0.5  ;;  %v3551_v21 = vsel %vm617_vm14, 1.0, %v4170_v63  ;;  %v3570_v4 = vld [vmem:[#allocation9 + $0x8] sm:$0xff] }
  0xc8   : > { %2631 = vmatpush3.bf16.msra.mxu0 %v2628_v61  ;;  %v549_v53 = vadd.f32 0.5, %v3458_v12  ;;  %v3464_v55 = vfloor.f32 %v555_v13  ;;  %4227 = vst [vmem:[#allocation21_spill] sm:$0xff] %v3466_v56  ;;  %vm604_vm3 = vcmp.le.f32.partialorder %v3466_v56, 6.5  ;;  %v572_v32 = vmul.f32 8.0, %v3466_v56  ;;  %4232 = vst [vmem:[#allocation26_spill] sm:$0xff] %v3520_v39  ;;  %v3700_v56 = vld [vmem:[#allocation9 + $0x28] sm:$0xff] }
  0xc9   : > { %2665 = vmatprep.subr.bf16.mxu0 %v3435_v24  ;;  %v3482_v60 = vsel %vm604_vm3, 1.0, %v4170_v63  ;;  %v544_v17 = vadd.f32 0.5, %v536_v16  ;;  %v1391_v11 = vmul.f32 %v3520_v39, %v3433_v0  ;;  %v3562_v26 = vsel %vm618_vm1, 1.0, %v4170_v63 }
  0xca   : > { %4226 = vst [vmem:[#allocation20_spill] sm:$0xff] %v3464_v55  ;;  %v557_v57 = vmul.f32 0.125, %v549_v53  ;;  %vm603_vm2 = vcmp.le.f32.partialorder %v3464_v55, 6.5  ;;  %v571_v27 = vmul.f32 8.0, %v3464_v55  ;;  %v3510_v36 = vsub.f32 %v3446_v44, %v572_v32 }
  0xcb   : > { %v3479_v59 = vsel %vm603_vm2, 1.0, %v4170_v63  ;;  %v552_v18 = vmul.f32 0.125, %v544_v17  ;;  %v3532_v44 = vsel %vm634_vm10, 1.0, %v4170_v63  ;;  %vm639_vm2 = vcmp.le.f32.partialorder %v3512_v37, 6.5  ;;  %v807_v17 = vld [vmem:[#allocation9 + $0x128] sm:$0xff] }
  0xcc   : > { %v3484_v61 = vfloor.f32 %v557_v57  ;;  %v579_v34 = vsub.f32 %v539_v43, %v571_v27  ;;  %vm636_vm13 = vcmp.le.f32.partialorder %v3510_v36, 6.5  ;;  %v3568_v57 = vld [vmem:[#allocation9] sm:$0xff]  ;;  %v3573_v5 = vsel %vm639_vm2, 1.0, %v4170_v63 }
  0xcd   : > { %v3499_v19 = vfloor.f32 %v552_v18  ;;  %v3547_v20 = vsel %vm636_vm13, 1.0, %v4170_v63  ;;  %v574_v18 = vmul.f32 8.0, %v3476_v58  ;;  %vm620_vm7 = vcmp.ge.f32.partialorder %v3510_v36, 0.5 }
  0xce   : > { %4230 = vst [vmem:[#allocation24_spill] sm:$0xff] %v3484_v61  ;;  %vm605_vm6 = vcmp.le.f32.partialorder %v3484_v61, 6.5  ;;  %vm635_vm12 = vcmp.le.f32.partialorder %v579_v34, 6.5  ;;  %v573_v42 = vmul.f32 8.0, %v3484_v61  ;;  %vm619_vm3 = vcmp.ge.f32.partialorder %v579_v34, 0.5  ;;  %v3674_v61 = vld [vmem:[#allocation9 + $0xa0] sm:$0xff] }
  0xcf   : > { %v3496_v3 = vsel %vm605_vm6, 1.0, %v4170_v63  ;;  %4231 = vst [vmem:[#allocation25_spill] sm:$0xff] %v3499_v19  ;;  %v568_v23 = vmul.f32 8.0, %v3499_v19  ;;  %vm584_vm0 = vcmp.ge.f32.partialorder %v3499_v19, 0.5  ;;  %v3538_v9 = vsel %vm635_vm12, 1.0, %v4170_v63 }
  0xd0   : > { %v3556_v52 = vsub.f32 %v3458_v12, %v573_v42  ;;  %v3559_v13 = vsel %vm584_vm0, 1.0, %v4170_v63  ;;  %v3576_v12 = vsel %vm619_vm3, 1.0, %v4170_v63  ;;  %vm623_vm6 = vcmp.ge.f32.partialorder %v3512_v37, 0.5 }
  0xd1   : > { %v576_v28 = vsub.f32 %v536_v16, %v568_v23  ;;  %4235 = vst [vmem:[#allocation29_spill] sm:$0xff] %v3559_v13  ;;  %v806_v16 = vld [vmem:[#allocation9 + $0x120] sm:$0xff]  ;;  %v1352_v2 = vmul.f32 %v3562_v26, %v3472_v38 }
  0xd2   : > { %vm637_vm4 = vcmp.le.f32.partialorder %v3556_v52, 6.5 }
  0xd3   : > { %vm616_vm8 = vcmp.ge.f32.partialorder %v576_v28, 0.5  ;;  %vm632_vm9 = vcmp.le.f32.partialorder %v576_v28, 6.5 }
  0xd4   : > { %v3524_v40 = vsel %vm616_vm8, 1.0, %v4170_v63  ;;  %v3527_v41 = vsel %vm632_vm9, 1.0, %v4170_v63  ;;  %vm621_vm8 = vcmp.ge.f32.partialorder %v3556_v52, 0.5 }
  0xd5   : > { %4233 = vst [vmem:[#allocation27_spill] sm:$0xff] %v3524_v40  ;;  %4234 = vst [vmem:[#allocation28_spill] sm:$0xff] %v3527_v41  ;;  %v3588_v29 = vmul.f32 %v3527_v41, %v3559_v13  ;;  %v809_v13 = vld [vmem:[#allocation9 + $0x138] sm:$0xff] }
 0x17e   : > { %v2350_v43 = vpop.f32.mrb[0].mxu0 }
 0x17f   : > { %v446_v45 = vadd.f32 %v2350_v43, %v3517_v10  ;;  %v440_v46 = vpop.f32.mrb[1].mxu0  ;;  %v3607_v43 = vpack.c.bf16 %v807_v17, %v806_v16 }
 0x180   : > { %v441_v14 = vadd.f32 %v3517_v10, %v440_v46  ;;  %v3611_v46 = vld [vmem:[#allocation9 + $0x98] sm:$0xff] }
 0x181   : > { %v3553_v50 = vmax.f32 %v446_v45, 0.0  ;;  %v3609_v45 = vld [vmem:[#allocation9 + $0x90] sm:$0xff] }
 0x182   : > { %v3564_v53 = vmax.f32 %v441_v14, 0.0  ;;  %v2353_v54 = vpop.f32.mrb[2].mxu0 }
 0x183   : > { %v456_v6 = vadd.f32 %v2353_v54, %v3517_v10  ;;  %v450_v7 = vpop.f32.mrb[3].mxu0  ;;  %v706_v8 = vrot.slane %v3553_v50, 1  ;;  %v649_v23 = vrot.slane %v3553_v50, 7 }
 0x184   : > { %4236 = vst [vmem:[#allocation30_spill] sm:$0xff] %v3564_v53  ;;  %v451_v25 = vadd.f32 %v3517_v10, %v450_v7  ;;  %994 = vmatprep.mubr.f32.mxu1 %v3564_v53  ;;  %v4168_v27 = vrot.slane %v3564_v53, 1  ;;  %v4169_v28 = vrot.slane %v3564_v53, 7  ;;  %v3597_v33 = vmul.f32 %v3493_v1, %v3564_v53 }
 0x185   : > { %v3590_v30 = vmax.f32 %v456_v6, 0.0  ;;  %v3624_v7 = vsub.f32 %v3453_v49, %v574_v18  ;;  %v3639_v18 = vld [vmem:[#allocation9 + $0x10] sm:$0xff]  ;;  %v4249_v51 = vrot.slane %v3564_v53, 7 }
 0x186   : > { %4238 = vst [vmem:[#allocation32_spill] sm:$0xff] %v3597_v33  ;;  %v3599_v34 = vmax.f32 %v451_v25, 0.0  ;;  %v2356_v35 = vpop.f32.mrb[4].mxu0  ;;  %v3605_v42 = vsel %vm713_vm11, %v4168_v27, %v706_v8  ;;  %v3617_v47 = vsel %vm656_vm15, %v4169_v28, %v649_v23  ;;  %v3631_v25 = vsel %vm637_vm4, 1.0, %v4170_v63  ;;  %v3641_v27 = vld [vmem:[#allocation9 + $0x18] sm:$0xff] }
 0x187   : > { %4237 = vst [vmem:[#allocation31_spill] sm:$0xff] %v3590_v30  ;;  %4239 = vst [vmem:[#allocation33_spill] sm:$0xff] %v3605_v42  ;;  %v466_v48 = vadd.f32 %v2356_v35, %v3517_v10  ;;  %v460_v14 = vpop.f32.mrb[5].mxu0  ;;  %v842_v54 = vmul.f32 %v3605_v42, %v3527_v41  ;;  %v708_v6 = vrot.slane %v3590_v30, 1  ;;  %vm638_vm5 = vcmp.le.f32.partialorder %v3624_v7, 6.5  ;;  %v3772_v42 = vld [vmem:[#allocation9 + $0xc8] sm:$0xff] }
 0x188   : > { %v707_v16 = vrot.slane %v3599_v34, 1  ;;  %v461_v17 = vadd.f32 %v3517_v10, %v460_v14  ;;  %v650_v35 = vrot.slane %v3599_v34, 7  ;;  %v651_v14 = vrot.slane %v3590_v30, 7 }
 0x189   : > { %v3634_v32 = vmax.f32 %v466_v48, 0.0  ;;  %2392 = vmatprep.mubr.f32.mxu0 %v842_v54  ;;  %vm622_vm9 = vcmp.ge.f32.partialorder %v3624_v7, 0.5  ;;  %v1395_v37 = vmul.f32 %v3631_v25, %v3496_v3 }
 0x18a   : > { %v3644_v28 = vmax.f32 %v461_v17, 0.0  ;;  %v2359_v63 = vpop.f32.mrb[6].mxu0  ;;  %v3648_v33 = vsel %vm713_vm11, %v706_v8, %v707_v16  ;;  %v3652_v48 = vsel %vm713_vm11, %v707_v16, %v708_v6  ;;  %v3656_v54 = vsel %vm656_vm15, %v649_v23, %v650_v35 }
 0x18b   : > { %4240 = vst [vmem:[#allocation34_spill] sm:$0xff] %v3634_v32  ;;  %4242 = vst [vmem:[#allocation36_spill] sm:$0xff] %v3648_v33  ;;  %v476_v49 = vadd.f32 %v2359_v63, %v3517_v10  ;;  %v470_v41 = vpop.f32.mrb[7].mxu0  ;;  %v843_v17 = vmul.f32 %v3648_v33, %v3520_v39  ;;  %v844_v19 = vmul.f32 %v3652_v48, %v3532_v44  ;;  %v710_v23 = vrot.slane %v3634_v32, 1  ;;  %v3696_v63 = vld [vmem:[#allocation9 + $0xa8] sm:$0xff] }
 0x18c   : > { %4241 = vst [vmem:[#allocation35_spill] sm:$0xff] %v3644_v28  ;;  %4243 = vst [vmem:[#allocation37_spill] sm:$0xff] %v3652_v48  ;;  %v3664_v8 = vmul.f32 %v1391_v11, %v3652_v48  ;;  %v471_v16 = vadd.f32 %v3517_v10, %v470_v41  ;;  %v709_v58 = vrot.slane %v3644_v28, 1  ;;  %v3678_v11 = vsel %vm656_vm15, %v650_v35, %v651_v14  ;;  %v3698_v48 = vld [vmem:[#allocation9 + $0x20] sm:$0xff] }
 0x18d   : > { %v3672_v33 = vmax.f32 %v476_v49, 0.0  ;;  %2393 = vmatmul.mubr.f32.vlgmr.msra.gmra.mrb[8].mxu0 %v843_v17  ;;  %v652_v10 = vrot.slane %v3644_v28, 7  ;;  %v653_v41 = vrot.slane %v3634_v32, 7  ;;  %v3694_v35 = vpack.c.bf16 %v809_v13, %v808_v22  ;;  %v810_v13 = vld [vmem:[#allocation9 + $0x140] sm:$0xff] }
 0x18e   : > { %4244 = vst [vmem:[#allocation38_spill] sm:$0xff] %v3664_v8  ;;  %v3683_v8 = vmax.f32 %v471_v16, 0.0  ;;  %2667 = vmatpush3.bf16.msra.mxu0 %v3435_v24  ;;  %2395 = vmatprep.mubr.f32.mxu0 %v844_v19  ;;  %v3688_v49 = vsel %vm713_vm11, %v708_v6, %v709_v58  ;;  %v3692_v17 = vsel %vm713_vm11, %v709_v58, %v710_v23  ;;  %v811_v16 = vld [vmem:[#allocation9 + $0x148] sm:$0xff]  ;;  %v4251_v32 = vrot.slane %v3564_v53, 1 }
 0x18f   : > { %4245 = vst [vmem:[#allocation39_spill] sm:$0xff] %v3672_v33  ;;  %2669 = vmatprep.subr.bf16.mxu0 %v3566_v31  ;;  %v845_v24 = vmul.f32 %v3688_v49, %v3538_v9  ;;  %v846_v19 = vmul.f32 %v3692_v17, %v3547_v20  ;;  %v655_v6 = vrot.slane %v3672_v33, 7  ;;  %v712_v58 = vrot.slane %v3672_v33, 1 }
 0x190   : > { %4246 = vst [vmem:[#allocation40_spill] sm:$0xff] %v3683_v8  ;;  %v711_v22 = vrot.slane %v3683_v8, 1  ;;  %v3712_v39 = vsel %vm656_vm15, %v651_v14, %v652_v10  ;;  %v3716_v55 = vsel %vm656_vm15, %v652_v10, %v653_v41  ;;  %v654_v15 = vrot.slane %v3683_v8, 7  ;;  %v3735_v8 = vld [vmem:[#allocation9 + $0xb0] sm:$0xff] }
 0x191   : > { %4247 = vst [vmem:[#allocation41_spill] sm:$0xff] %v3712_v39  ;;  %4248 = vst [vmem:[#allocation42_spill] sm:$0xff] %v3716_v55  ;;  %2396 = vmatmul.mubr.f32.gmra.mrb[10].mxu0 %v845_v24  ;;  %v3723_v33 = vsel %vm656_vm15, %v655_v6, %v4249_v51  ;;  %v3729_v28 = vsel %vm713_vm11, %v712_v58, %v4251_v32  ;;  %v2640_v14 = vpack.c.bf16 %v3696_v63, %v3674_v61  ;;  %v3737_v24 = vld [vmem:[#allocation9 + $0xb8] sm:$0xff]  ;;  %v4252_v53 = vmov 0.0   ;;  %v3755_v10 = vld [vmem:[#allocation9 + $0x30] sm:$0xff] }
 0x192   : > { %4250 = vst [vmem:[#allocation43_spill] sm:$0xff] %v3723_v33  ;;  %2671 = vmatpush3.bf16.msra.mxu0 %v3566_v31  ;;  %2398 = vmatprep.mubr.f32.mxu0 %v846_v19  ;;  %v818_v51 = vmul.f32 %v3723_v33, %v3524_v40  ;;  %v3744_v32 = vsel %vm713_vm11, %v710_v23, %v711_v22  ;;  %v3749_v61 = vsel %vm638_vm5, 1.0, %v4252_v53  ;;  %v3757_v31 = vld [vmem:[#allocation9 + $0x38] sm:$0xff]  ;;  %v812_v33 = vld [vmem:[#allocation9 + $0x150] sm:$0xff]  ;;  %v3770_v39 = vld [vmem:[#allocation9 + $0xc0] sm:$0xff]  ;;  %v3840_v36 = vsel %vm621_vm8, 1.0, %v4252_v53 }
 0x193   : > { %v3753_v63 = vsel %vm713_vm11, %v711_v22, %v712_v58  ;;  %2673 = vmatprep.subr.bf16.mxu0 %v3607_v43  ;;  %v847_v19 = vmul.f32 %v3744_v32, %v3631_v25  ;;  %v3764_v40 = vpack.c.bf16 %v811_v16, %v810_v13  ;;  %v813_v55 = vld [vmem:[#allocation9 + $0x158] sm:$0xff]  ;;  %v1351_v58 = vmul.f32 %v3551_v21, %v3433_v0 }
 0x194   : > { %v848_v23 = vmul.f32 %v3753_v63, %v3749_v61  ;;  %995 = vmatmul.mubr.f32.vlgmr.msra.gmra.mrb[0].mxu1 %v818_v51  ;;  %v2644_v22 = vpack.c.bf16 %v3737_v24, %v3735_v8  ;;  %v3776_v30 = vsel %vm656_vm15, %v653_v41, %v654_v15  ;;  %v3780_v13 = vsel %vm656_vm15, %v654_v15, %v655_v6  ;;  %v814_v6 = vld [vmem:[#allocation9 + $0x160] sm:$0xff]  ;;  %v815_v24 = vld [vmem:[#allocation9 + $0x168] sm:$0xff] }
 0x195   : > { %v1392_v16 = vmul.f32 %v3532_v44, %v3472_v38  ;;  %v4253_v51 = vpack.c.bf16 %v3570_v4, %v3568_v57  ;;  %999 = vmatprep.mubr.f32.mxu1 %v3553_v50  ;;  %v1393_v41 = vmul.f32 %v3538_v9, %v3479_v59  ;;  %2399 = vmatmul.mubr.f32.gmra.mrb[12].mxu0 %v847_v19 }
 0x196   : > { %v4254_v15 = vpack.c.bf16 %v3611_v46, %v3609_v45  ;;  %v819_v57 = vmul.f32 %v3617_v47, %v3551_v21  ;;  %v3800_v4 = vpack.c.bf16 %v813_v55, %v812_v33  ;;  %2675 = vmatpush3.bf16.msra.mxu0 %v3607_v43  ;;  %2401 = vmatprep.mubr.f32.mxu0 %v848_v23  ;;  %v3811_v45 = vsel %vm623_vm6, 1.0, %v4252_v53 }
 0x197   : > { %2635 = vmatpush3.bf16.msra.mxu1 %v4253_v51  ;;  %v1394_v51 = vmul.f32 %v3547_v20, %v3482_v60  ;;  %v1397_v55 = vmul.f32 %v3573_v5, %v3493_v1  ;;  %v1353_v33 = vmul.f32 %v3576_v12, %v3479_v59  ;;  %2677 = vmatprep.subr.bf16.mxu0 %v3694_v35  ;;  %v3823_v46 = vsel %vm620_vm7, 1.0, %v4252_v53 }
 0x198   : > { %2637 = vmatprep.subr.bf16.mxu1 %v4254_v15  ;;  %1000 = vmatmul.mubr.f32.gmra.mrb[2].mxu1 %v819_v57  ;;  %v849_v43 = vmul.f32 %v3729_v28, %v3573_v5  ;;  %v1396_v23 = vmul.f32 %v3749_v61, %v3490_v62  ;;  %v4255_v15 = vpack.c.bf16 %v3641_v27, %v3639_v18  ;;  %v3849_v18 = vsel %vm622_vm9, 1.0, %v4252_v53 }
 0x199   : > { %1004 = vmatprep.mubr.f32.mxu1 %v3599_v34  ;;  %v730_v57 = vmul.f32 %v3588_v29, %v3729_v28  ;;  %v3835_v19 = vpack.c.bf16 %v815_v24, %v814_v6  ;;  %v1354_v8 = vmul.f32 %v3823_v46, %v3482_v60  ;;  %v820_v27 = vmul.f32 %v3656_v54, %v3562_v26 }
 0x19a   : > { %2402 = vmatmul.mubr.f32.gmra.mrb[14].mxu0 %v849_v43  ;;  %v1355_v29 = vmul.f32 %v3840_v36, %v3496_v3  ;;  %v1357_v52 = vmul.f32 %v3811_v45, %v3493_v1  ;;  %v3857_v6 = vmul.f32 %v1392_v16, %v3688_v49  ;;  %v1356_v7 = vmul.f32 %v3849_v18, %v3490_v62 }
 0x19b   : > { %2639 = vmatpush3.bf16.msra.mxu1 %v4255_v15  ;;  %2679 = vmatpush3.bf16.msra.mxu0 %v3694_v35  ;;  %v821_v24 = vmul.f32 %v3678_v11, %v3576_v12  ;;  %v3868_v1 = vmul.f32 %v1394_v51, %v3744_v32  ;;  %v3871_v35 = vmul.f32 %v1395_v37, %v3753_v63  ;;  %v778_v51 = vld [vmem:[#allocation9 + $0x40] sm:$0xff]  ;;  %v779_v37 = vld [vmem:[#allocation9 + $0x48] sm:$0xff] }
 0x19c   : > { %2641 = vmatprep.subr.bf16.mxu1 %v2640_v14  ;;  %2436 = vmatprep.mubr.f32.mxu0 %v730_v57  ;;  %v3860_v14 = vmul.f32 %v1393_v41, %v3692_v17  ;;  %v4257_v16 = vpack.c.bf16 %v3700_v56, %v3698_v48  ;;  %v4258_v41 = vld [vmem:[#allocation31_spill] sm:$0xff]  ;;  %v3879_v43 = vmul.f32 %v3433_v0, %v3599_v34 }
 0x19d   : > { %1005 = vmatmul.mubr.f32.gmra.mrb[4].mxu1 %v820_v27  ;;  %2681 = vmatprep.subr.bf16.mxu0 %v3764_v40  ;;  %4256 = vst [vmem:[#allocation44_spill] sm:$0xff] %v3871_v35  ;;  %v3882_v15 = vmul.f32 %v1396_v23, %v3729_v28  ;;  %v3885_v57 = vmul.f32 %v1351_v58, %v3656_v54  ;;  %v4262_v27 = vld [vmem:[#allocation33_spill] sm:$0xff]  ;;  %v4266_v0 = vld [vmem:[#allocation35_spill] sm:$0xff]  ;;  %v796_v58 = vld [vmem:[#allocation9 + $0xd0] sm:$0xff] }
 0x19e   : > { %1009 = vmatprep.mubr.f32.mxu1 %v4258_v41  ;;  %4259 = vst [vmem:[#allocation31_spill] sm:$0xff] %v3879_v43  ;;  %v3888_v35 = vmul.f32 %v1397_v55, %v4262_v27  ;;  %v3892_v56 = vmul.f32 %v3472_v38, %v4258_v41  ;;  %v3895_v48 = vmul.f32 %v1352_v2, %v3678_v11  ;;  %v4268_v23 = vld [vmem:[#allocation41_spill] sm:$0xff]  ;;  %v4270_v55 = vld [vmem:[#allocation34_spill] sm:$0xff]  ;;  %v4274_v2 = vld [vmem:[#allocation40_spill] sm:$0xff] }
 0x19f   : > { %2643 = vmatpush3.bf16.msra.mxu1 %v4257_v16  ;;  %4260 = vst [vmem:[#allocation45_spill] sm:$0xff] %v3882_v15  ;;  %4261 = vst [vmem:[#allocation46_spill] sm:$0xff] %v3885_v57  ;;  %v3899_v28 = vmul.f32 %v3479_v59, %v4266_v0  ;;  %2683 = vmatpush3.bf16.msra.mxu0 %v3764_v40  ;;  %v3903_v16 = vmul.f32 %v1353_v33, %v4268_v23  ;;  %v4272_v38 = vld [vmem:[#allocation42_spill] sm:$0xff]  ;;  %v4277_v40 = vld [vmem:[#allocation39_spill] sm:$0xff] }
 0x1a0   : > { %2645 = vmatprep.subr.bf16.mxu1 %v2644_v22  ;;  %4263 = vst [vmem:[#allocation33_spill] sm:$0xff] %v3888_v35  ;;  %4264 = vst [vmem:[#allocation47_spill] sm:$0xff] %v3892_v56  ;;  %v797_v22 = vld [vmem:[#allocation9 + $0xd8] sm:$0xff]  ;;  %v3907_v35 = vmul.f32 %v3482_v60, %v4270_v55  ;;  %v3910_v56 = vmul.f32 %v1354_v8, %v4272_v38  ;;  %2685 = vmatprep.subr.bf16.mxu0 %v3800_v4  ;;  %v1475_v57 = vld [vmem:[#allocation9 + $0x428] sm:$0xff] }
 0x1a1   : > { %4265 = vst [vmem:[#allocation48_spill] sm:$0xff] %v3895_v48  ;;  %4267 = vst [vmem:[#allocation35_spill] sm:$0xff] %v3899_v28  ;;  %v3914_v48 = vmul.f32 %v3496_v3, %v4274_v2  ;;  %1010 = vmatmul.mubr.f32.gmra.mrb[6].mxu1 %v821_v24  ;;  %v3918_v59 = vmul.f32 %v1355_v29, %v3776_v30  ;;  %v3922_v33 = vmul.f32 %v3490_v62, %v4277_v40  ;;  %v816_v24 = vld [vmem:[#allocation9 + $0x170] sm:$0xff]  ;;  %v4282_v29 = vld [vmem:[#allocation43_spill] sm:$0xff] }
 0x1a2   : > { %4269 = vst [vmem:[#allocation41_spill] sm:$0xff] %v3903_v16  ;;  %4271 = vst [vmem:[#allocation34_spill] sm:$0xff] %v3907_v35  ;;  %v3925_v60 = vmul.f32 %v1356_v7, %v3780_v13  ;;  %v4280_v35 = vld [vmem:[#allocation18_spill] sm:$0xff]  ;;  %v4281_v8 = vpack.c.bf16 %v3757_v31, %v3755_v10  ;;  %1014 = vmatprep.mubr.f32.mxu1 %v4266_v0  ;;  %v2650_v3 = vpack.c.bf16 %v779_v37, %v778_v51  ;;  %v799_v31 = vld [vmem:[#allocation9 + $0xe8] sm:$0xff] }
 0x1a3   : > { %4273 = vst [vmem:[#allocation42_spill] sm:$0xff] %v3910_v56  ;;  %4275 = vst [vmem:[#allocation40_spill] sm:$0xff] %v3914_v48  ;;  %vm585_vm10 = vcmp.ge.f32.partialorder %v4280_v35, 0.5  ;;  %v817_v48 = vld [vmem:[#allocation9 + $0x178] sm:$0xff]  ;;  %v4284_v62 = vpack.c.bf16 %v3772_v42, %v3770_v39  ;;  %v822_v7 = vmul.f32 %v4268_v23, %v3823_v46  ;;  %v2652_v35 = vpack.c.bf16 %v797_v22, %v796_v58  ;;  %v798_v10 = vld [vmem:[#allocation9 + $0xe0] sm:$0xff] }
 0x1a4   : > { %4276 = vst [vmem:[#allocation49_spill] sm:$0xff] %v3918_v59  ;;  %4278 = vst [vmem:[#allocation39_spill] sm:$0xff] %v3922_v33  ;;  %2647 = vmatpush3.bf16.msra.mxu1 %v4281_v8  ;;  %v3933_v59 = vmul.f32 %v1357_v52, %v4282_v29  ;;  %v781_v33 = vld [vmem:[#allocation9 + $0x58] sm:$0xff]  ;;  %2687 = vmatpush3.bf16.msra.mxu0 %v3800_v4  ;;  %v3942_v51 = vsel %vm585_vm10, 1.0, %v4252_v53  ;;  %v2692_v52 = vpack.c.bf16 %v817_v48, %v816_v24  ;;  %v1470_v42 = vld [vmem:[#allocation9 + $0x400] sm:$0xff] }
 0x1a5   : > { %4279 = vst [vmem:[#allocation50_spill] sm:$0xff] %v3925_v60  ;;  %2649 = vmatprep.subr.bf16.mxu1 %v4284_v62  ;;  %v780_v60 = vld [vmem:[#allocation9 + $0x50] sm:$0xff]  ;;  %1015 = vmatmul.mubr.f32.gmra.mrb[8].mxu1 %v822_v7  ;;  %v1471_v37 = vld [vmem:[#allocation9 + $0x408] sm:$0xff]  ;;  %v823_v4 = vmul.f32 %v4272_v38, %v3840_v36  ;;  %v2656_v8 = vpack.c.bf16 %v799_v31, %v798_v10  ;;  %v782_v62 = vld [vmem:[#allocation9 + $0x60] sm:$0xff] }
 0x1a6   : > { %4283 = vst [vmem:[#allocation18_spill] sm:$0xff] %v3933_v59  ;;  %2689 = vmatprep.subr.bf16.mxu0 %v3835_v19  ;;  %1019 = vmatprep.mubr.f32.mxu1 %v4270_v55  ;;  %v2654_v39 = vpack.c.bf16 %v781_v33, %v780_v60  ;;  %v4285_v58 = vld [vmem:[#allocation19_spill] sm:$0xff]  ;;  %v4286_v22 = vld [vmem:[#allocation20_spill] sm:$0xff]  ;;  %v4287_v59 = vld [vmem:[#allocation26_spill] sm:$0xff]  ;;  %v2728_v60 = vpack.c.bf16 %v1471_v37, %v1470_v42 }
 0x1a7   : > { %vm586_vm11 = vcmp.ge.f32.partialorder %v4285_v58, 0.5  ;;  %vm587_vm12 = vcmp.ge.f32.partialorder %v4286_v22, 0.5  ;;  %v783_v7 = vld [vmem:[#allocation9 + $0x68] sm:$0xff]  ;;  %v723_v48 = vmul.f32 %v4287_v59, %v3942_v51  ;;  %v801_v33 = vld [vmem:[#allocation9 + $0xf8] sm:$0xff]  ;;  %v1472_v59 = vld [vmem:[#allocation9 + $0x410] sm:$0xff]  ;;  %v824_v42 = vmul.f32 %v3776_v30, %v3849_v18 }
 0x1a8   : > { %2651 = vmatpush3.bf16.msra.mxu1 %v2650_v3  ;;  %2691 = vmatpush3.bf16.msra.mxu0 %v3835_v19  ;;  %v800_v3 = vld [vmem:[#allocation9 + $0xf0] sm:$0xff]  ;;  %v3954_v24 = vsel %vm586_vm11, 1.0, %v4252_v53  ;;  %v4288_v58 = vld [vmem:[#allocation21_spill] sm:$0xff]  ;;  %v2658_v10 = vpack.c.bf16 %v783_v7, %v782_v62  ;;  %v1454_v7 = vld [vmem:[#allocation9 + $0x380] sm:$0xff] }
 0x1a9   : > { %2653 = vmatprep.subr.bf16.mxu1 %v2652_v35  ;;  %1020 = vmatmul.mubr.f32.gmra.mrb[10].mxu1 %v823_v4  ;;  %v3957_v35 = vsel %vm587_vm12, 1.0, %v4252_v53  ;;  %vm588_vm13 = vcmp.ge.f32.partialorder %v4288_v58, 0.5  ;;  %v724_v19 = vmul.f32 %v3532_v44, %v3954_v24  ;;  %v1473_v31 = vld [vmem:[#allocation9 + $0x418] sm:$0xff]  ;;  %v4289_v22 = vld [vmem:[#allocation24_spill] sm:$0xff]  ;;  %v2660_v37 = vpack.c.bf16 %v801_v33, %v800_v3  ;;  %v1455_v44 = vld [vmem:[#allocation9 + $0x388] sm:$0xff] }
 0x1aa   : > { %2693 = vmatprep.subr.bf16.mxu0 %v2692_v52  ;;  %1024 = vmatprep.mubr.f32.mxu1 %v4274_v2  ;;  %vm589_vm14 = vcmp.ge.f32.partialorder %v4289_v22, 0.5  ;;  %v784_v4 = vld [vmem:[#allocation9 + $0x70] sm:$0xff]  ;;  %v785_v56 = vld [vmem:[#allocation9 + $0x78] sm:$0xff]  ;;  %v3969_v62 = vsel %vm588_vm13, 1.0, %v4252_v53  ;;  %v731_v58 = vmul.f32 %v723_v48, %v4262_v27  ;;  %v4290_v3 = vld [vmem:[#allocation23_spill] sm:$0xff] }
 0x1ab   : > { %v3973_v22 = vsel %vm589_vm14, 1.0, %v4252_v53  ;;  %vm590_vm15 = vcmp.ge.f32.partialorder %v4290_v3, 0.5  ;;  %v2662_v33 = vpack.c.bf16 %v785_v56, %v784_v4  ;;  %v726_v16 = vmul.f32 %v3547_v20, %v3969_v62  ;;  %v1474_v28 = vld [vmem:[#allocation9 + $0x420] sm:$0xff]  ;;  %v4292_v27 = vld [vmem:[#allocation29_spill] sm:$0xff]  ;;  %v4293_v48 = vld [vmem:[#allocation27_spill] sm:$0xff] }
 0x1ac   : > { %2655 = vmatpush3.bf16.msra.mxu1 %v2654_v39  ;;  %2695 = vmatpush3.bf16.msra.mxu0 %v2692_v52  ;;  %v725_v39 = vmul.f32 %v3538_v9, %v3957_v35  ;;  %v4291_v52 = vld [vmem:[#allocation36_spill] sm:$0xff]  ;;  %v1439_v15 = vld [vmem:[#allocation9 + $0x308] sm:$0xff]  ;;  %v4294_v43 = vld [vmem:[#allocation22_spill] sm:$0xff]  ;;  %v689_v20 = vmul.f32 %v4292_v27, %v4277_v40  ;;  %v727_v56 = vmul.f32 %v3631_v25, %v3973_v22 }
 0x1ad   : > { %2657 = vmatprep.subr.bf16.mxu1 %v2656_v8  ;;  %1025 = vmatmul.mubr.f32.gmra.mrb[12].mxu1 %v824_v42  ;;  %v2732_v8 = vpack.c.bf16 %v1473_v31, %v1472_v59  ;;  %v732_v9 = vmul.f32 %v724_v19, %v4291_v52  ;;  %v665_v59 = vmul.f32 %v4293_v48, %v4292_v27  ;;  %vm591_vm0 = vcmp.ge.f32.partialorder %v4294_v43, 0.5  ;;  %v1457_v4 = vld [vmem:[#allocation9 + $0x398] sm:$0xff] }
 0x1ae   : > { %2729 = vmatprep.subr.bf16.mxu0 %v2728_v60  ;;  %1029 = vmatprep.mubr.f32.mxu1 %v4277_v40  ;;  %v825_v31 = vmul.f32 %v3780_v13, %v3811_v45  ;;  %v2696_v42 = vpack.c.bf16 %v1455_v44, %v1454_v7  ;;  %v3992_v19 = vsel %vm590_vm15, 1.0, %v4252_v53  ;;  %v4295_v7 = vld [vmem:[#allocation37_spill] sm:$0xff]  ;;  %v734_v40 = vmul.f32 %v726_v16, %v3688_v49  ;;  %v1458_v16 = vld [vmem:[#allocation9 + $0x3a0] sm:$0xff] }
 0x1af   : > { %2437 = vmatmul.mubr.f32.vlgmr.msra.gmra.mrb[8].mxu0 %v731_v58  ;;  %v733_v44 = vmul.f32 %v725_v39, %v4295_v7  ;;  %v2736_v58 = vpack.c.bf16 %v1475_v57, %v1474_v28  ;;  %v4001_v3 = vsel %vm591_vm0, 1.0, %v4252_v53  ;;  %v1477_v27 = vld [vmem:[#allocation9 + $0x438] sm:$0xff]  ;;  %v673_v39 = vmul.f32 %v665_v59, %v3780_v13  ;;  %v1440_v28 = vld [vmem:[#allocation9 + $0x310] sm:$0xff]  ;;  %v1443_v7 = vld [vmem:[#allocation9 + $0x328] sm:$0xff] }
 0x1b0   : > { %2659 = vmatpush3.bf16.msra.mxu1 %v2658_v10  ;;  %v1438_v10 = vld [vmem:[#allocation9 + $0x300] sm:$0xff]  ;;  %2439 = vmatprep.mubr.f32.mxu0 %v732_v9  ;;  %v1476_v9 = vld [vmem:[#allocation9 + $0x430] sm:$0xff]  ;;  %v1441_v49 = vld [vmem:[#allocation9 + $0x318] sm:$0xff]  ;;  %v729_v13 = vmul.f32 %v3573_v5, %v4001_v3 }
 0x1b1   : > { %2661 = vmatprep.subr.bf16.mxu1 %v2660_v37  ;;  %2731 = vmatpush3.bf16.msra.mxu0 %v2728_v60  ;;  %v1456_v37 = vld [vmem:[#allocation9 + $0x390] sm:$0xff]  ;;  %v728_v60 = vmul.f32 %v3749_v61, %v3992_v19  ;;  %v2698_v25 = vpack.c.bf16 %v1439_v15, %v1438_v10  ;;  %v666_v61 = vmul.f32 %v3551_v21, %v3942_v51  ;;  %v4297_v15 = vld [vmem:[#allocation30_spill] sm:$0xff] }
 0x1b2   : > { %1030 = vmatmul.mubr.f32.gmra.mrb[14].mxu1 %v825_v31  ;;  %2733 = vmatprep.subr.bf16.mxu0 %v2732_v8  ;;  %v4296_v31 = vld [vmem:[#allocation25_spill] sm:$0xff]  ;;  %v2700_v57 = vpack.c.bf16 %v1457_v4, %v1456_v37  ;;  %v690_v43 = vmul.f32 %v3942_v51, %v4297_v15  ;;  %v735_v10 = vmul.f32 %v727_v56, %v3692_v17  ;;  %v1478_v37 = vld [vmem:[#allocation9 + $0x440] sm:$0xff]  ;;  %v1479_v17 = vld [vmem:[#allocation9 + $0x448] sm:$0xff] }
 0x1b3   : > { %1204 = vmatprep.mubr.f32.mxu1 %v689_v20  ;;  %vm600_vm1 = vcmp.le.f32.partialorder %v4296_v31, 6.5  ;;  %2440 = vmatmul.mubr.f32.gmra.mrb[10].mxu0 %v733_v44  ;;  %v2740_v59 = vpack.c.bf16 %v1477_v27, %v1476_v9  ;;  %v2702_v51 = vpack.c.bf16 %v1441_v49, %v1440_v28  ;;  %v674_v5 = vmul.f32 %v666_v61, %v4282_v29  ;;  %v1460_v44 = vld [vmem:[#allocation9 + $0x3b0] sm:$0xff]  ;;  %v1481_v27 = vld [vmem:[#allocation9 + $0x458] sm:$0xff]  ;;  %v1462_v61 = vld [vmem:[#allocation9 + $0x3c0] sm:$0xff] }
 0x1b4   : > { %2663 = vmatpush3.bf16.msra.mxu1 %v2662_v33  ;;  %2442 = vmatprep.mubr.f32.mxu0 %v734_v40  ;;  %v1459_v33 = vld [vmem:[#allocation9 + $0x3a8] sm:$0xff]  ;;  %v4015_v21 = vsel %vm600_vm1, 1.0, %v4252_v53  ;;  %v667_v4 = vmul.f32 %v3562_v26, %v3954_v24  ;;  %v1442_v53 = vld [vmem:[#allocation9 + $0x320] sm:$0xff]  ;;  %v737_v40 = vmul.f32 %v729_v13, %v3753_v63  ;;  %v1480_v26 = vld [vmem:[#allocation9 + $0x450] sm:$0xff]  ;;  %v692_v63 = vmul.f32 %v3957_v35, %v3599_v34 }
 0x1b5   : > { %2697 = vmatprep.subr.bf16.mxu1 %v2696_v42  ;;  %2735 = vmatpush3.bf16.msra.mxu0 %v2732_v8  ;;  %v736_v8 = vmul.f32 %v728_v60, %v3744_v32  ;;  %v4298_v42 = vld [vmem:[#allocation28_spill] sm:$0xff]  ;;  %v2704_v56 = vpack.c.bf16 %v1459_v33, %v1458_v16  ;;  %v691_v32 = vmul.f32 %v3954_v24, %v3553_v50  ;;  %v1461_v60 = vld [vmem:[#allocation9 + $0x3b8] sm:$0xff]  ;;  %v1482_v15 = vld [vmem:[#allocation9 + $0x460] sm:$0xff] }
 0x1b6   : > { %2737 = vmatprep.subr.bf16.mxu0 %v2736_v58  ;;  %v1390_v20 = vmul.f32 %v4298_v42, %v4015_v21  ;;  %v2706_v9 = vpack.c.bf16 %v1443_v7, %v1442_v53  ;;  %v2708_v31 = vpack.c.bf16 %v1461_v60, %v1460_v44  ;;  %v668_v24 = vmul.f32 %v3576_v12, %v3957_v35  ;;  %v1447_v13 = vld [vmem:[#allocation9 + $0x348] sm:$0xff]  ;;  %v1464_v35 = vld [vmem:[#allocation9 + $0x3d0] sm:$0xff]  ;;  %v1469_v60 = vld [vmem:[#allocation9 + $0x3f8] sm:$0xff] }
 0x1b7   : > { %1205 = vmatmul.mubr.f32.vlgmr.msra.gmra.mrb[16].mxu1 %v673_v39  ;;  %2443 = vmatmul.mubr.f32.gmra.mrb[12].mxu0 %v735_v10  ;;  %v1444_v39 = vld [vmem:[#allocation9 + $0x330] sm:$0xff]  ;;  %v2748_v28 = vpack.c.bf16 %v1481_v27, %v1480_v26  ;;  %v669_v33 = vmul.f32 %v3823_v46, %v3969_v62  ;;  %v1446_v10 = vld [vmem:[#allocation9 + $0x340] sm:$0xff]  ;;  %v693_v34 = vmul.f32 %v3969_v62, %v4258_v41  ;;  %v1451_v44 = vld [vmem:[#allocation9 + $0x368] sm:$0xff] }
 0x1b8   : > { %2699 = vmatpush3.bf16.msra.mxu1 %v2698_v25  ;;  %1209 = vmatprep.mubr.f32.mxu1 %v690_v43  ;;  %v2744_v25 = vpack.c.bf16 %v1479_v17, %v1478_v37  ;;  %v1398_v29 = vmul.f32 %v1390_v20, %v4291_v52  ;;  %v1463_v52 = vld [vmem:[#allocation9 + $0x3c8] sm:$0xff]  ;;  %v676_v12 = vmul.f32 %v668_v24, %v3656_v54  ;;  %v1484_v42 = vld [vmem:[#allocation9 + $0x470] sm:$0xff]  ;;  %v1485_v54 = vld [vmem:[#allocation9 + $0x478] sm:$0xff] }
 0x1b9   : > { %2701 = vmatprep.subr.bf16.mxu1 %v2700_v57  ;;  %2445 = vmatprep.mubr.f32.mxu0 %v736_v8  ;;  %v1445_v57 = vld [vmem:[#allocation9 + $0x338] sm:$0xff]  ;;  %v1483_v43 = vld [vmem:[#allocation9 + $0x468] sm:$0xff]  ;;  %v2712_v16 = vpack.c.bf16 %v1463_v52, %v1462_v61  ;;  %v677_v20 = vmul.f32 %v669_v33, %v3678_v11  ;;  %v670_v37 = vmul.f32 %v3840_v36, %v3973_v22  ;;  %v1448_v17 = vld [vmem:[#allocation9 + $0x350] sm:$0xff] }
 0x1ba   : > { %2739 = vmatpush3.bf16.msra.mxu0 %v2736_v58  ;;  %v675_v58 = vmul.f32 %v667_v4, %v3617_v47  ;;  %v2710_v49 = vpack.c.bf16 %v1445_v57, %v1444_v39  ;;  %v2752_v8 = vpack.c.bf16 %v1483_v43, %v1482_v15  ;;  %v694_v41 = vmul.f32 %v3973_v22, %v4266_v0  ;;  %v1466_v62 = vld [vmem:[#allocation9 + $0x3e0] sm:$0xff]  ;;  %v1468_v22 = vld [vmem:[#allocation9 + $0x3f0] sm:$0xff]  ;;  %v4312_v39 = vld [vmem:[#allocation49_spill] sm:$0xff] }
 0x1bb   : > { %1210 = vmatmul.mubr.f32.gmra.mrb[18].mxu1 %v674_v5  ;;  %2741 = vmatprep.subr.bf16.mxu0 %v2740_v59  ;;  %v1449_v5 = vld [vmem:[#allocation9 + $0x358] sm:$0xff]  ;;  %v2756_v4 = vpack.c.bf16 %v1485_v54, %v1484_v42  ;;  %v678_v11 = vmul.f32 %v670_v37, %v4268_v23  ;;  %v671_v36 = vmul.f32 %v3849_v18, %v3992_v19  ;;  %v4299_v27 = vld [vmem:[#allocation38_spill] sm:$0xff]  ;;  %v4311_v24 = vld [vmem:[#allocation40_spill] sm:$0xff] }
 0x1bc   : > { %2703 = vmatpush3.bf16.msra.mxu1 %v2702_v51  ;;  %1214 = vmatprep.mubr.f32.mxu1 %v691_v32  ;;  %v2714_v51 = vpack.c.bf16 %v1447_v13, %v1446_v10  ;;  %v2718_v53 = vpack.c.bf16 %v1449_v5, %v1448_v17  ;;  %v1450_v32 = vld [vmem:[#allocation9 + $0x360] sm:$0xff]  ;;  %v695_v0 = vmul.f32 %v3992_v19, %v4270_v55  ;;  %v4313_v57 = vld [vmem:[#allocation39_spill] sm:$0xff]  ;;  %v4315_v61 = vld [vmem:[#allocation32_spill] sm:$0xff] }
 0x1bd   : > { %2446 = vmatmul.mubr.f32.gmra.mrb[14].mxu0 %v737_v40  ;;  %2705 = vmatprep.subr.bf16.mxu1 %v2704_v56  ;;  %v1467_v56 = vld [vmem:[#allocation9 + $0x3e8] sm:$0xff]  ;;  %v2722_v40 = vpack.c.bf16 %v1451_v44, %v1450_v32  ;;  %v679_v23 = vmul.f32 %v671_v36, %v4272_v38  ;;  %v672_v18 = vmul.f32 %v3811_v45, %v4001_v3  ;;  %v4316_v52 = vld [vmem:[#allocation18_spill] sm:$0xff]  ;;  %v1729_v43 = vld [vmem:[#allocation10 + $0x10] sm:$0xff] }
 0x1be   : > { %2743 = vmatpush3.bf16.msra.mxu0 %v2740_v59  ;;  %2480 = vmatprep.mubr.f32.mxu0 %v1398_v29  ;;  %v1465_v59 = vld [vmem:[#allocation9 + $0x3d8] sm:$0xff]  ;;  %v2720_v7 = vpack.c.bf16 %v1467_v56, %v1466_v62  ;;  %v1452_v29 = vld [vmem:[#allocation9 + $0x370] sm:$0xff]  ;;  %v696_v55 = vmul.f32 %v4001_v3, %v4274_v2  ;;  %v1350_v26 = vmul.f32 %v4293_v48, %v4015_v21  ;;  %v4300_v48 = vld [vmem:[#allocation31_spill] sm:$0xff] }
 0x1bf   : > { %1215 = vmatmul.mubr.f32.gmra.mrb[20].mxu1 %v675_v58  ;;  %2745 = vmatprep.subr.bf16.mxu0 %v2744_v25  ;;  %v2716_v46 = vpack.c.bf16 %v1465_v59, %v1464_v35  ;;  %v680_v38 = vmul.f32 %v672_v18, %v3776_v30  ;;  %v1374_v45 = vmul.f32 %v4015_v21, %v3553_v50  ;;  %v4301_v3 = vld [vmem:[#allocation44_spill] sm:$0xff]  ;;  %v4302_v30 = vld [vmem:[#allocation45_spill] sm:$0xff]  ;;  %v4304_v58 = vld [vmem:[#allocation47_spill] sm:$0xff] }
 0x1c0   : > { %2707 = vmatpush3.bf16.msra.mxu1 %v2706_v9  ;;  %1219 = vmatprep.mubr.f32.mxu1 %v692_v63  ;;  %v1453_v9 = vld [vmem:[#allocation9 + $0x378] sm:$0xff]  ;;  %v1358_v2 = vmul.f32 %v1350_v26, %v3617_v47  ;;  %v4306_v21 = vld [vmem:[#allocation48_spill] sm:$0xff]  ;;  %v4314_v63 = vld [vmem:[#allocation50_spill] sm:$0xff] }
 0x1c1   : > { %2709 = vmatprep.subr.bf16.mxu1 %v2708_v31  ;;  %v2726_v19 = vpack.c.bf16 %v1453_v9, %v1452_v29  ;;  %v4305_v50 = vld [vmem:[#allocation33_spill] sm:$0xff]  ;;  %v4310_v31 = vld [vmem:[#allocation42_spill] sm:$0xff]  ;;  %v1732_v10 = vld [vmem:[#allocation10 + $0x28] sm:$0xff] }
 0x1c2   : > { %2747 = vmatpush3.bf16.msra.mxu0 %v2744_v25  ;;  %v2724_v25 = vpack.c.bf16 %v1469_v60, %v1468_v22  ;;  %v4308_v47 = vld [vmem:[#allocation41_spill] sm:$0xff]  ;;  %v1731_v33 = vld [vmem:[#allocation10 + $0x20] sm:$0xff]  ;;  %v1737_v54 = vld [vmem:[#allocation10 + $0x50] sm:$0xff] }
 0x1c3   : > { %1220 = vmatmul.mubr.f32.gmra.mrb[22].mxu1 %v676_v12  ;;  %2749 = vmatprep.subr.bf16.mxu0 %v2748_v28  ;;  %v1730_v12 = vld [vmem:[#allocation10 + $0x18] sm:$0xff]  ;;  %v2768_v13 = vpack.c.bf16 %v1732_v10, %v1731_v33  ;;  %v1739_v37 = vld [vmem:[#allocation10 + $0x60] sm:$0xff]  ;;  %v1740_v17 = vld [vmem:[#allocation10 + $0x68] sm:$0xff] }
 0x1c4   : > { %2711 = vmatpush3.bf16.msra.mxu1 %v2710_v49  ;;  %1224 = vmatprep.mubr.f32.mxu1 %v693_v34  ;;  %v1728_v49 = vld [vmem:[#allocation10 + $0x8] sm:$0xff]  ;;  %v1733_v34 = vld [vmem:[#allocation10 + $0x30] sm:$0xff]  ;;  %v1734_v35 = vld [vmem:[#allocation10 + $0x38] sm:$0xff] }
 0x1c5   : > { %2713 = vmatprep.subr.bf16.mxu1 %v2712_v16  ;;  %v2764_v16 = vpack.c.bf16 %v1730_v12, %v1729_v43  ;;  %v2772_v59 = vpack.c.bf16 %v1734_v35, %v1733_v34  ;;  %v1741_v5 = vld [vmem:[#allocation10 + $0x70] sm:$0xff]  ;;  %v1742_v62 = vld [vmem:[#allocation10 + $0x78] sm:$0xff] }
 0x1c6   : > { %2751 = vmatpush3.bf16.msra.mxu0 %v2748_v28  ;;  %v1727_v28 = vld [vmem:[#allocation10] sm:$0xff]  ;;  %v2788_v56 = vpack.c.bf16 %v1742_v62, %v1741_v5 }
 0x1c7   : > { %1225 = vmatmul.mubr.f32.gmra.mrb[24].mxu1 %v677_v20  ;;  %2753 = vmatprep.subr.bf16.mxu0 %v2752_v8  ;;  %v2760_v15 = vpack.c.bf16 %v1728_v49, %v1727_v28  ;;  %v1738_v20 = vld [vmem:[#allocation10 + $0x58] sm:$0xff] }
 0x1c8   : > { %2715 = vmatpush3.bf16.msra.mxu1 %v2714_v51  ;;  %1229 = vmatprep.mubr.f32.mxu1 %v694_v41  ;;  %v1736_v51 = vld [vmem:[#allocation10 + $0x48] sm:$0xff]  ;;  %v2784_v41 = vpack.c.bf16 %v1740_v17, %v1739_v37 }
 0x1c9   : > { %2717 = vmatprep.subr.bf16.mxu1 %v2716_v46  ;;  %v2780_v46 = vpack.c.bf16 %v1738_v20, %v1737_v54 }
 0x1ca   : > { %2755 = vmatpush3.bf16.msra.mxu0 %v2752_v8  ;;  %v1735_v8 = vld [vmem:[#allocation10 + $0x40] sm:$0xff] }
 0x1cb   : > { %1230 = vmatmul.mubr.f32.gmra.mrb[26].mxu1 %v678_v11  ;;  %2757 = vmatprep.subr.bf16.mxu0 %v2756_v4  ;;  %v2776_v42 = vpack.c.bf16 %v1736_v51, %v1735_v8 }
 0x1cc   : > { %2719 = vmatpush3.bf16.msra.mxu1 %v2718_v53  ;;  %1234 = vmatprep.mubr.f32.mxu1 %v695_v0 }
 0x1cd   : > { %2721 = vmatprep.subr.bf16.mxu1 %v2720_v7 }
 0x1ce   : > { %2759 = vmatpush3.bf16.msra.mxu0 %v2756_v4 }
 0x1cf   : > { %1235 = vmatmul.mubr.f32.gmra.mrb[28].mxu1 %v679_v23 }
 0x1d0   : > { %2723 = vmatpush3.bf16.msra.mxu1 %v2722_v40  ;;  %1239 = vmatprep.mubr.f32.mxu1 %v696_v55 }
 0x1d1   : > { %2481 = vmatmul.mubr.f32.vlgmr.msra.gmra.mrb[8].mxu0 %v4299_v27  ;;  %2725 = vmatprep.subr.bf16.mxu1 %v2724_v25 }
 0x1d2   : > { %2483 = vmatprep.mubr.f32.mxu0 %v3857_v6  ;;  %v4303_v6 = vld [vmem:[#allocation46_spill] sm:$0xff] }
 0x1d3   : > { %1240 = vmatmul.mubr.f32.gmra.mrb[30].mxu1 %v680_v38 }
 0x1d4   : > { %2727 = vmatpush3.bf16.msra.mxu1 %v2726_v19  ;;  %1550 = vmatprep.mubr.f32.mxu1 %v1374_v45 }
 0x1d5   : > { %2484 = vmatmul.mubr.f32.gmra.mrb[10].mxu0 %v3860_v14  ;;  %v4307_v14 = vld [vmem:[#allocation35_spill] sm:$0xff]  ;;  %2761 = vmatprep.subr.bf16.mxu1 %v2760_v15 }
 0x1d6   : > { %2486 = vmatprep.mubr.f32.mxu0 %v3868_v1  ;;  %v4309_v1 = vld [vmem:[#allocation34_spill] sm:$0xff] }
 0x1d7   : > { %1551 = vmatmul.mubr.f32.vlgmr.msra.gmra.mrb[32].mxu1 %v1358_v2 }
 0x1d8   : > { %1555 = vmatprep.mubr.f32.mxu1 %v4300_v48  ;;  %2763 = vmatpush3.bf16.msra.mxu1 %v2760_v15 }
 0x1d9   : > { %2487 = vmatmul.mubr.f32.gmra.mrb[12].mxu0 %v4301_v3  ;;  %2765 = vmatprep.subr.bf16.mxu1 %v2764_v16 }
 0x1da   : > { %2489 = vmatprep.mubr.f32.mxu0 %v4302_v30 }
 0x1db   : > { %1556 = vmatmul.mubr.f32.gmra.mrb[34].mxu1 %v4303_v6 }
 0x1dc   : > { %1560 = vmatprep.mubr.f32.mxu1 %v4304_v58  ;;  %2767 = vmatpush3.bf16.msra.mxu1 %v2764_v16 }
 0x1dd   : > { %2490 = vmatmul.mubr.f32.gmra.mrb[14].mxu0 %v4305_v50  ;;  %2769 = vmatprep.subr.bf16.mxu1 %v2768_v13 }
 0x1df   : > { %1561 = vmatmul.mubr.f32.gmra.mrb[36].mxu1 %v4306_v21 }
 0x1e0   : > { %1565 = vmatprep.mubr.f32.mxu1 %v4307_v14  ;;  %2771 = vmatpush3.bf16.msra.mxu1 %v2768_v13 }
 0x1e1   : > { %2773 = vmatprep.subr.bf16.mxu1 %v2772_v59 }
 0x1e3   : > { %1566 = vmatmul.mubr.f32.gmra.mrb[38].mxu1 %v4308_v47 }
 0x1e4   : > { %1570 = vmatprep.mubr.f32.mxu1 %v4309_v1  ;;  %2775 = vmatpush3.bf16.msra.mxu1 %v2772_v59 }
 0x1e5   : > { %2777 = vmatprep.subr.bf16.mxu1 %v2776_v42 }
 0x1e7   : > { %1571 = vmatmul.mubr.f32.gmra.mrb[40].mxu1 %v4310_v31 }
 0x1e8   : > { %1575 = vmatprep.mubr.f32.mxu1 %v4311_v24  ;;  %2779 = vmatpush3.bf16.msra.mxu1 %v2776_v42 }
 0x1e9   : > { %2781 = vmatprep.subr.bf16.mxu1 %v2780_v46 }
 0x1eb   : > { %1576 = vmatmul.mubr.f32.gmra.mrb[42].mxu1 %v4312_v39 }
 0x1ec   : > { %1580 = vmatprep.mubr.f32.mxu1 %v4313_v57  ;;  %2783 = vmatpush3.bf16.msra.mxu1 %v2780_v46 }
 0x1ed   : > { %2785 = vmatprep.subr.bf16.mxu1 %v2784_v41 }
 0x1ef   : > { %1581 = vmatmul.mubr.f32.gmra.mrb[44].mxu1 %v4314_v63 }
 0x1f0   : > { %1585 = vmatprep.mubr.f32.mxu1 %v4315_v61  ;;  %2787 = vmatpush3.bf16.msra.mxu1 %v2784_v41 }
 0x1f1   : > { %2789 = vmatprep.subr.bf16.mxu1 %v2788_v56 }
 0x1f3   : > { %1586 = vmatmul.mubr.f32.gmra.mrb[46].mxu1 %v4316_v52 }
 0x1f4   : > { %2791 = vmatpush3.bf16.msra.mxu1 %v2788_v56 }
 0x267   : > { %v2084_v4 = vpop.f32.mrb[0].mxu1 }
 0x268   : > { %v2085_v53 = vpop.f32.mrb[1].mxu1 }
 0x269   : > { %v2086_v11 = vadd.f32 %v2085_v53, %v2084_v4 }
 0x26b   : > { %v2087_v7 = vpop.f32.mrb[2].mxu1 }
 0x26c   : > { %v2088_v36 = vpop.f32.mrb[3].mxu1 }
 0x26d   : > { %v2089_v32 = vadd.f32 %v2088_v36, %v2087_v7  ;;  %v2019_v36 = vld [vmem:[%s4161_s5] ss:$0 sm:$0xff] }
 0x270   : > { %v2090_v44 = vpop.f32.mrb[4].mxu1 }
 0x271   : > { %v2091_v0 = vpop.f32.mrb[5].mxu1 }
 0x272   : > { %v2092_v22 = vadd.f32 %v2091_v0, %v2090_v44 }
 0x274   : > { %v2093_v60 = vpop.f32.mrb[6].mxu1 }
 0x275   : > { %v2094_v40 = vpop.f32.mrb[7].mxu1 }
 0x276   : > { %v2095_v23 = vadd.f32 %v2094_v40, %v2093_v60 }
 0x278   : > { %v2096_v25 = vpop.f32.mrb[8].mxu1 }
 0x279   : > { %v2097_v18 = vpop.f32.mrb[9].mxu1 }
 0x27a   : > { %v2098_v29 = vadd.f32 %v2097_v18, %v2096_v25 }
 0x27c   : > { %v2099_v9 = vpop.f32.mrb[10].mxu1 }
 0x27d   : > { %v2100_v55 = vpop.f32.mrb[11].mxu1 }
 0x27e   : > { %v2101_v19 = vadd.f32 %v2100_v55, %v2099_v9 }
 0x280   : > { %v2102_v26 = vpop.f32.mrb[12].mxu1 }
 0x281   : > { %v2103_v27 = vpop.f32.mrb[13].mxu1 }
 0x282   : > { %v2104_v38 = vadd.f32 %v2103_v27, %v2102_v26 }
 0x285   : > { %v2105_v45 = vpop.f32.mrb[14].mxu1 }
 0x286   : > { %v2106_v2 = vpop.f32.mrb[15].mxu1 }
 0x287   : > { %v2107_v48 = vadd.f32 %v2106_v2, %v2105_v45 }
 0x28a   : > { %v2164_v3 = vpop.f32.mrb[16].mxu1 }
 0x28b   : > { %v2165_v30 = vpop.f32.mrb[17].mxu1 }
 0x28c   : > { %v2166_v6 = vadd.f32 %v2165_v30, %v2164_v3 }
 0x28e   : > { %v2795_v58 = vadd.f32 %v2166_v6, %v2086_v11  ;;  %v2167_v50 = vpop.f32.mrb[18].mxu1 }
 0x28f   : > { %v2168_v21 = vpop.f32.mrb[19].mxu1 }
 0x290   : > { %v2169_v14 = vadd.f32 %v2168_v21, %v2167_v50 }
 0x292   : > { %v2792_v47 = vadd.f32 %v2169_v14, %v2089_v32  ;;  %v2170_v1 = vpop.f32.mrb[20].mxu1 }
 0x293   : > { %v2171_v31 = vpop.f32.mrb[21].mxu1 }
 0x294   : > { %v2172_v24 = vadd.f32 %v2171_v31, %v2170_v1 }
 0x296   : > { %v2801_v39 = vadd.f32 %v2172_v24, %v2092_v22  ;;  %v2173_v57 = vpop.f32.mrb[22].mxu1 }
 0x297   : > { %v2174_v63 = vpop.f32.mrb[23].mxu1 }
 0x298   : > { %v2175_v61 = vadd.f32 %v2174_v63, %v2173_v57 }
 0x29a   : > { %v2798_v52 = vadd.f32 %v2175_v61, %v2095_v23  ;;  %v2176_v28 = vpop.f32.mrb[24].mxu1 }
 0x29b   : > { %v2177_v49 = vpop.f32.mrb[25].mxu1 }
 0x29c   : > { %v2178_v15 = vadd.f32 %v2177_v49, %v2176_v28 }
 0x29e   : > { %v2807_v43 = vadd.f32 %v2178_v15, %v2098_v29  ;;  %v2179_v12 = vpop.f32.mrb[26].mxu1 }
 0x29f   : > { %v2180_v16 = vpop.f32.mrb[27].mxu1 }
 0x2a0   : > { %v2181_v33 = vadd.f32 %v2180_v16, %v2179_v12 }
 0x2a2   : > { %v2804_v10 = vadd.f32 %v2181_v33, %v2101_v19  ;;  %v2182_v13 = vpop.f32.mrb[28].mxu1 }
 0x2a3   : > { %v2183_v34 = vpop.f32.mrb[29].mxu1 }
 0x2a4   : > { %v2482_v35 = vpop.f32.mrb[8].mxu0  ;;  %v2184_v59 = vadd.f32 %v2183_v34, %v2182_v13 }
 0x2a5   : > { %v1657_v8 = vpop.f32.mrb[9].mxu0 }
 0x2a6   : > { %v2813_v51 = vadd.f32 %v2184_v59, %v2104_v38  ;;  %v2185_v42 = vpop.f32.mrb[30].mxu1 }
 0x2a7   : > { %v2186_v54 = vpop.f32.mrb[31].mxu1 }
 0x2a8   : > { %v2485_v20 = vpop.f32.mrb[10].mxu0  ;;  %v2187_v46 = vadd.f32 %v2186_v54, %v2185_v42 }
 0x2a9   : > { %v1667_v37 = vpop.f32.mrb[11].mxu0 }
 0x2aa   : > { %v2810_v17 = vadd.f32 %v2187_v46, %v2107_v48  ;;  %v2244_v5 = vpop.f32.mrb[32].mxu1 }
 0x2ab   : > { %v2245_v41 = vpop.f32.mrb[33].mxu1 }
 0x2ac   : > { %v2488_v62 = vpop.f32.mrb[12].mxu0  ;;  %v2246_v56 = vadd.f32 %v2245_v41, %v2244_v5  ;;  %v1856_v5 = vld [vmem:[%s3365_s8 + $0x8] sm:$0xff] }
 0x2ad   : > { %v1677_v4 = vpop.f32.mrb[13].mxu0 }
 0x2ae   : > { %v2796_v53 = vadd.f32 %v2795_v58, %v2246_v56  ;;  %v2247_v11 = vpop.f32.mrb[34].mxu1 }
 0x2af   : > { %v2248_v7 = vpop.f32.mrb[35].mxu1 }
 0x2b0   : > { %v2797_v32 = vadd.f32 %v2796_v53, %v1657_v8  ;;  %v2491_v44 = vpop.f32.mrb[14].mxu0  ;;  %v2249_v0 = vadd.f32 %v2248_v7, %v2247_v11 }
 0x2b1   : > { %v1687_v22 = vpop.f32.mrb[15].mxu0 }
 0x2b2   : > { %v2793_v60 = vadd.f32 %v2792_v47, %v2249_v0  ;;  %v2250_v40 = vpop.f32.mrb[36].mxu1  ;;  %v1711_v23 = vadd.f32 %v2797_v32, %v2019_v36  ;;  %v1858_v32 = vld [vmem:[%s3365_s8 + $0x18] sm:$0xff] }
 0x2b3   : > { %v2251_v25 = vpop.f32.mrb[37].mxu1 }
 0x2b4   : > { %v2794_v18 = vadd.f32 %v2793_v60, %v2482_v35  ;;  %v2252_v29 = vadd.f32 %v2251_v25, %v2250_v40  ;;  %v1719_v9 = vmax.f32 %v1711_v23, 0.0 }
 0x2b6   : > { %v1712_v55 = vadd.f32 %v2794_v18, %v2019_v36  ;;  %v2802_v19 = vadd.f32 %v2801_v39, %v2252_v29  ;;  %v2253_v26 = vpop.f32.mrb[38].mxu1  ;;  %2524 = vmatprep.mubr.f32.mxu1 %v1719_v9  ;;  %v1860_v9 = vld [vmem:[%s3365_s8 + $0x28] sm:$0xff] }
 0x2b7   : > { %v2254_v27 = vpop.f32.mrb[39].mxu1 }
 0x2b8   : > { %v1720_v38 = vmax.f32 %v1712_v55, 0.0  ;;  %v2803_v45 = vadd.f32 %v2802_v19, %v1667_v37  ;;  %v2255_v2 = vadd.f32 %v2254_v27, %v2253_v26  ;;  %v1859_v26 = vld [vmem:[%s3365_s8 + $0x20] sm:$0xff] }
 0x2ba   : > { %v2799_v48 = vadd.f32 %v2798_v52, %v2255_v2  ;;  %v2256_v3 = vpop.f32.mrb[40].mxu1  ;;  %2525 = vmatmul.mubr.f32.vlgmr.msra.gmra.mrb[48].mxu1 %v1720_v38  ;;  %v1713_v30 = vadd.f32 %v2803_v45, %v2019_v36 }
 0x2bb   : > { %v2257_v6 = vpop.f32.mrb[41].mxu1 }
 0x2bc   : > { %v2800_v58 = vadd.f32 %v2799_v48, %v2485_v20  ;;  %v2258_v50 = vadd.f32 %v2257_v6, %v2256_v3  ;;  %v1721_v21 = vmax.f32 %v1713_v30, 0.0  ;;  %v1862_v30 = vld [vmem:[%s3365_s8 + $0x38] sm:$0xff] }
 0x2be   : > { %v2808_v14 = vadd.f32 %v2807_v43, %v2258_v50  ;;  %v2259_v47 = vpop.f32.mrb[42].mxu1  ;;  %2527 = vmatprep.mubr.f32.mxu1 %v1721_v21  ;;  %v1714_v1 = vadd.f32 %v2800_v58, %v2019_v36  ;;  %v1861_v50 = vld [vmem:[%s3365_s8 + $0x30] sm:$0xff] }
 0x2bf   : > { %v2260_v31 = vpop.f32.mrb[43].mxu1 }
 0x2c0   : > { %v2809_v24 = vadd.f32 %v2808_v14, %v1677_v4  ;;  %v2261_v39 = vadd.f32 %v2260_v31, %v2259_v47  ;;  %v1722_v57 = vmax.f32 %v1714_v1, 0.0 }
 0x2c2   : > { %v2805_v63 = vadd.f32 %v2804_v10, %v2261_v39  ;;  %v2262_v61 = vpop.f32.mrb[44].mxu1  ;;  %2528 = vmatmul.mubr.f32.gmra.mrb[50].mxu1 %v1722_v57  ;;  %v1715_v28 = vadd.f32 %v2809_v24, %v2019_v36 }
 0x2c3   : > { %v2263_v52 = vpop.f32.mrb[45].mxu1 }
 0x2c4   : > { %v2806_v49 = vadd.f32 %v2805_v63, %v2488_v62  ;;  %v2264_v15 = vadd.f32 %v2263_v52, %v2262_v61  ;;  %v1723_v12 = vmax.f32 %v1715_v28, 0.0 }
 0x2c6   : > { %v2814_v16 = vadd.f32 %v2813_v51, %v2264_v15  ;;  %v2265_v33 = vpop.f32.mrb[46].mxu1  ;;  %2530 = vmatprep.mubr.f32.mxu1 %v1723_v12  ;;  %v1716_v13 = vadd.f32 %v2806_v49, %v2019_v36  ;;  %v2020_v51 = vld [vmem:[%s4162_s6] ss:$0 sm:$0xff] }
 0x2c7   : > { %v2266_v43 = vpop.f32.mrb[47].mxu1 }
 0x2c8   : > { %v2815_v34 = vadd.f32 %v2814_v16, %v1687_v22  ;;  %v2267_v35 = vadd.f32 %v2266_v43, %v2265_v33  ;;  %v1724_v59 = vmax.f32 %v1716_v13, 0.0  ;;  %v1857_v22 = vld [vmem:[%s3365_s8 + $0x10] sm:$0xff] }
 0x2ca   : > { %v2811_v8 = vadd.f32 %v2810_v17, %v2267_v35  ;;  %2531 = vmatmul.mubr.f32.gmra.mrb[52].mxu1 %v1724_v59  ;;  %v1717_v10 = vadd.f32 %v2815_v34, %v2019_v36  ;;  %v1855_v17 = vld [vmem:[%s3365_s8] sm:$0xff]  ;;  %s3028_s8 = scalar_lea.vmem %s4105_s20, 1024 }
 0x2cb   : > { %p3029_p10 = scmp.ne.s32.totalorder %s4105_s20, %s3028_s8  ;;  %p3036_p1 = scmp.lt.s32.totalorder %s3034_s9, %s3028_s8 }
 0x2cc   : > { %v2812_v42 = vadd.f32 %v2811_v8, %v2491_v44  ;;  %v1725_v54 = vmax.f32 %v1717_v10, 0.0 }
 0x2cd   : > { %p3030_p3 = pnand %p3029_p10, %p3308_p5  ;;  %p3037_p2 = por %p3036_p1, %p3035_p12 }
 0x2ce   : > { %2533 = vmatprep.mubr.f32.mxu1 %v1725_v54  ;;  %v1718_v20 = vadd.f32 %v2812_v42, %v2019_v36 }
 0x2cf   : > { %p3031_p7 = pneg %p3030_p3 }
 0x2d0   : > { %v1726_v46 = vmax.f32 %v1718_v20, 0.0 }
 0x2d1   : > { %p3038_p4 = pnand %p3037_p2, %p3031_p7 }
 0x2d2   : > { %2534 = vmatmul.mubr.f32.gmra.mrb[54].mxu1 %v1726_v46 }
 0x38d   : > { %v2526_v37 = vpop.f32.mrb[48].mxu1 }
 0x38e   : > { %v1822_v41 = vadd.f32 %v2526_v37, %v2020_v51  ;;  %v1816_v62 = vpop.f32.mrb[49].mxu1 }
 0x38f   : > { %v1817_v56 = vadd.f32 %v2020_v51, %v1816_v62 }
 0x390   : > { %v1864_v4 = vadd.f32 %v1856_v5, %v1822_v41 }
 0x391   : > { %v1863_v53 = vadd.f32 %v1855_v17, %v1817_v56 }
 0x392   : > { %v1872_v11 = vmax.f32 %v1864_v4, 0.0 }
 0x393   : > { %v1871_v7 = vmax.f32 %v1863_v53, 0.0 }
 0x394   : > { %1880 = vst [vmem:[%s4089_s12 + $0x8] sm:$0xff] %v1872_v11 }
 0x395   : > { %1879 = vst [vmem:[%s4089_s12] sm:$0xff] %v1871_v7  ;;  %v2529_v36 = vpop.f32.mrb[50].mxu1 }
 0x396   : > { %v1832_v44 = vadd.f32 %v2529_v36, %v2020_v51  ;;  %v1826_v0 = vpop.f32.mrb[51].mxu1 }
 0x397   : > { %v1827_v60 = vadd.f32 %v2020_v51, %v1826_v0 }
 0x398   : > { %v1866_v40 = vadd.f32 %v1858_v32, %v1832_v44 }
 0x399   : > { %v1865_v23 = vadd.f32 %v1857_v22, %v1827_v60 }
 0x39a   : > { %v1874_v25 = vmax.f32 %v1866_v40, 0.0 }
 0x39b   : > { %v1873_v18 = vmax.f32 %v1865_v23, 0.0 }
 0x39c   : > { %1882 = vst [vmem:[%s4089_s12 + $0x18] sm:$0xff] %v1874_v25 }
 0x39d   : > { %1881 = vst [vmem:[%s4089_s12 + $0x10] sm:$0xff] %v1873_v18  ;;  %v2532_v29 = vpop.f32.mrb[52].mxu1 }
 0x39e   : > { %v1842_v55 = vadd.f32 %v2532_v29, %v2020_v51  ;;  %v1836_v19 = vpop.f32.mrb[53].mxu1 }
 0x39f   : > { %v1837_v27 = vadd.f32 %v2020_v51, %v1836_v19 }
 0x3a0   : > { %v1868_v38 = vadd.f32 %v1860_v9, %v1842_v55 }
 0x3a1   : > { %v1867_v45 = vadd.f32 %v1859_v26, %v1837_v27 }
 0x3a2   : > { %v1876_v2 = vmax.f32 %v1868_v38, 0.0 }
 0x3a3   : > { %v1875_v48 = vmax.f32 %v1867_v45, 0.0 }
 0x3a4   : > { %1884 = vst [vmem:[%s4089_s12 + $0x28] sm:$0xff] %v1876_v2 }
 0x3a5   : > { %1883 = vst [vmem:[%s4089_s12 + $0x20] sm:$0xff] %v1875_v48  ;;  %v2535_v3 = vpop.f32.mrb[54].mxu1 }
 0x3a6   : > { %v1852_v6 = vadd.f32 %v2535_v3, %v2020_v51  ;;  %v1846_v58 = vpop.f32.mrb[55].mxu1 }
 0x3a7   : > { %v1847_v21 = vadd.f32 %v2020_v51, %v1846_v58 }
 0x3a8   : > { %v1870_v14 = vadd.f32 %v1862_v30, %v1852_v6 }
 0x3a9   : > { %v1869_v47 = vadd.f32 %v1861_v50, %v1847_v21 }
 0x3aa   : > { %v1878_v1 = vmax.f32 %v1870_v14, 0.0 }
 0x3ab   : > { %v1877_v31 = vmax.f32 %v1869_v47, 0.0 }
 0x3ac   : > { %1886 = vst [vmem:[%s4089_s12 + $0x38] sm:$0xff] %v1878_v1 }
 0x3ad   : > { %1885 = vst [vmem:[%s4089_s12 + $0x30] sm:$0xff] %v1877_v31 }
 0x3ae   : > { %3041 = shalt.err (!%p3038_p4)
}
 0x3af   : > { %s3042_s13 = scalar_lea.hbm %s4110_s23, 1024  ;;  %s3046_s14 = scalar_lea.hbm %s4163_s7, 2048 }
 0x3b0   : > { %p3043_p9 = scmp.ne.s32.totalorder %s4110_s23, %s3042_s13  ;;  %p3047_p8 = scmp.lt.u32.totalorder %s4110_s23, %s4163_s7 }
 0x3b1   : > { %p3048_p13 = scmp.lt.u32.totalorder %s3046_s14, %s3042_s13  ;;  %p3050_p10 = scmp.lt.u32.totalorder %s3042_s13, %s4110_s23 }
 0x3b2   : > { %p3044_p0 = pnand %p3043_p9, %p3308_p5 }
 0x3b3   : > { %p3049_p6 = por %p3048_p13, %p3047_p8 }
 0x3b4   : > { %p3045_p11 = pneg %p3044_p0 }
 0x3b5   : > { %p3051_p3 = por %p3050_p10, %p3049_p6 }
 0x3b7   : > { %p3052_p7 = pnand %p3051_p3, %p3045_p11 }
 0x3b9   : > { %3055 = shalt.err (!%p3052_p7)
}
 0x3ba   : > { %s3112_s16 = smov 128   ;;  %s3113_s29 = smov 8  }
 0x3bb   : > { %2846 = dma.vmem_to_hbm [thread:$0]  (%p3308_p5), %s4105_s20, 1024, %s4110_s23, %s1888_s11, %s3112_s16, %s3112_s16, %s3113_s29  }
 0x3bc PF: > { %s4317_s8 = sld [smem:[#allocation17_spill]]  ;;  %s1916_s28 = sand.u32 1, %s3090_s24  }
 0x3bd   : > { %p4319_p1 = scmp.ge.s32.totalorder %s3102_s27, 2  ;;  %s1917_s30 = scalar_lea.sflag [#allocation6], %s1916_s28 }
 0x3c2   : > { %p4318_p12 = scmp.ne.s32.totalorder %s4317_s8, 0 }
 0x3c4   : > { %p2863_p2 = pnand %p4319_p1, %p4318_p12 }
 0x3c6   : > { %3085 = dma.done.wait (!%p2863_p2), %s1917_s30, 1024  }
 0x3c7   : > { %3087 = vsyncadd (!%p2863_p2), %s1917_s30, 4294966272  ;;  %p22_p4 = scmp.ge.s32.totalorder %s3294_s22, 4   ;;  %s4320_s24 = smov %s3094_s25 }
 0x3c8   : > { %s4321_s25 = smov %s3098_s26  ;;  %s4322_s26 = smov %s3304_s18 }
 0x3c9   : > { %s4323_s27 = smov %s3294_s22  ;;  %24 = sbr.rel (!%p22_p4) target bundleno = 7 (0x7), region = 105 }
 0x3d0   :  { %1922 = vsyncpa [#allocation5], 1 }
 0x3d1   :  { %1924 = vsyncpa [#allocation5 + $0x1], 1 }
 0x3d2   :  { %1925 = vsyncpa [#allocation8], 1 }
 0x3d3   :  { %1926 = vsyncpa [#allocation11], 1 }
 0x3d4   :  { %1927 = vsyncpa [#allocation6], 1 }
 0x3d5   :  { %1929 = vsyncpa [#allocation6 + $0x1], 1 }

</bundles_post_ra>
